<compile_context>
chip_gen: v6e
topology: v6e:2x2x1
jax: 0.10.0
libtpu: 0.0.40
codegen_flags: <defaults>
</compile_context>

<pallas_src>
import jax
import jax.numpy as jnp
from jax.experimental import pallas as pl
from jax.experimental.pallas import tpu as pltpu

_EPS = 1e-5
_MM_DTYPE = jnp.bfloat16   # MXU operand dtype (f32 accumulation)
_ACT_DTYPE = jnp.bfloat16  # inter-stage activation storage dtype


# ----------------------------------------------------------------------------
# Device-aware tile sizing
# ----------------------------------------------------------------------------
def _vmem_limits():
    """Returns (tile-sizing budget, compiler vmem_limit_bytes)."""
    try:
        cap = int(pltpu.get_tpu_info().vmem_capacity_bytes)
    except Exception:  # no TPU info available -> be conservative (v7x-like)
        cap = 64 * 1024 * 1024
    limit = max(32 << 20, min(cap - (16 << 20), 112 << 20))
    return int(limit * 0.6), limit


def _lane_group(width):
    """Pixel-group factor g so g*width fills >= 128 lanes (1 if not possible)."""
    if width >= 128 or width <= 0 or 128 % width:
        return 1
    return 128 // width


def _pick_tile_m(m, unit, row_bytes, budget, min_grid=2):
    """Largest multiple-of-`unit` divisor of m that fits the VMEM budget;
    prefers >= min_grid grid steps (v7x megacore).  Falls back to one full
    block.
    # TODO(synk): ragged last tile (pl.cdiv grid + masked stats) instead of the
    # whole-array fallback when m has no friendly divisor."""
    limit = max(unit, budget // max(1, row_bytes))
    cands = [t for t in range(unit, m + 1, unit) if m % t == 0 and t <= limit]
    if not cands:
        return m
    best = max(cands)
    if m // best < min_grid:
        smaller = [t for t in cands if m // t >= min_grid]
        if smaller:
            best = max(smaller)
    return best


def _pick_tile_rows(h, n_batch, row_bytes, budget):
    """Largest divisor of h fitting the budget; prefers n_batch*(h//tr) >= 2."""
    limit = max(1, budget // max(1, row_bytes))
    divs = [d for d in range(1, h + 1) if h % d == 0 and d <= limit]
    if not divs:
        return 1
    best = max(divs)
    if n_batch * (h // best) < 2:
        smaller = [d for d in divs if n_batch * (h // d) >= 2]
        if smaller:
            best = max(smaller)
    return best


def _compiler_params(sem, vmem_limit):
    return pltpu.CompilerParams(dimension_semantics=sem,
                                vmem_limit_bytes=vmem_limit)


# ----------------------------------------------------------------------------
# Pallas kernels
# ----------------------------------------------------------------------------
def _conv1x1_stats_kernel(x_ref, w_ref, b_ref, y_ref, st_ref):
    """y = x @ W + b (bf16 operands, f32 accumulate).  Stores y in bf16 and
    per-tile per-lane (sum, centered sum-of-squares) taken from the f32
    accumulator before the downcast."""
    y = jnp.dot(x_ref[...].astype(_MM_DTYPE), w_ref[...],
                preferred_element_type=jnp.float32) + b_ref[...]
    s = jnp.sum(y, axis=0, keepdims=True)
    mu = s * (1.0 / y.shape[0])
    ssd = jnp.sum(jnp.square(y - mu), axis=0, keepdims=True)
    st_ref[...] = jnp.concatenate([s, ssd], axis=0)[None]
    y_ref[...] = y.astype(y_ref.dtype)


def _bn_mm_stats_kernel(x_ref, sc_ref, sh_ref, w_ref, b_ref, y_ref, st_ref):
    """Fused BN-apply + ReLU (f32 elementwise) -> y = x @ W + b (block-diag W,
    lane-dense in/out) -> bf16 store + BN partial stats."""
    x = jnp.maximum(x_ref[...].astype(jnp.float32) * sc_ref[...] + sh_ref[...],
                    0.0)
    y = jnp.dot(x.astype(_MM_DTYPE), w_ref[...],
                preferred_element_type=jnp.float32) + b_ref[...]
    s = jnp.sum(y, axis=0, keepdims=True)
    mu = s * (1.0 / y.shape[0])
    ssd = jnp.sum(jnp.square(y - mu), axis=0, keepdims=True)
    st_ref[...] = jnp.concatenate([s, ssd], axis=0)[None]
    y_ref[...] = y.astype(y_ref.dtype)


def _bn_mm_stats_phase_kernel(x_ref, sc_ref, sh_ref, w_ref, b_ref, y_ref,
                              st_ref):
    """Per-phase variant of _bn_mm_stats_kernel, used only when c4 is a
    multiple of 128 (lane-aligned slices; avoids 4x block-diagonal zeros)."""
    c, nf = w_ref.shape
    x = jnp.maximum(x_ref[...].astype(jnp.float32) * sc_ref[...] + sh_ref[...],
                    0.0).astype(_MM_DTYPE)
    y = jnp.concatenate(
        [jnp.dot(x[:, p * c:(p + 1) * c], w_ref[...],
                 preferred_element_type=jnp.float32) for p in range(4)],
        axis=-1) + b_ref[...]
    s = jnp.sum(y, axis=0, keepdims=True)
    mu = s * (1.0 / y.shape[0])
    ssd = jnp.sum(jnp.square(y - mu), axis=0, keepdims=True)
    st_ref[...] = jnp.concatenate([s, ssd], axis=0)[None]
    y_ref[...] = y.astype(y_ref.dtype)


def _deconv_phase_kernel(cur_ref, nxt_ref, sc_ref, sh_ref, w4_ref, b_ref,
                         y_ref, st_ref):
    """Fused BN1-apply + ReLU -> ConvTranspose2d(3x3, s=2, p=1, op=1) via the
    stride-2 sub-pixel (phase) decomposition.  Four accumulated dots of the
    shifted input pieces against the (C, 4C) row-blocks of the phase weight
    (no im2col concat buffer); emits a lane-dense phase-planar (rows, W, 4*C)
    bf16 tile plus BN2 partial stats from the f32 accumulator."""
    _, tr, ww, c = cur_ref.shape
    d4 = b_ref.shape[-1]
    sc = sc_ref[...]
    sh = sh_ref[...]

    cur = jnp.maximum(cur_ref[0].astype(jnp.float32) * sc + sh, 0.0)  # (tr,W,C)
    nxt = jnp.maximum(nxt_ref[0].astype(jnp.float32) * sc + sh, 0.0)  # (1,W,C)
    # The halo row below the tile does not exist for the last row-block.
    last = pl.program_id(1) == pl.num_programs(1) - 1
    nxt = nxt * jnp.where(last, 0.0, 1.0)

    def shift_cols(t):
        # t[:, b, :] <- t[:, b+1, :], zero at the right image edge.
        # TODO(synk): pltpu.roll(axis=1) + iota mask would move this to the XLU.
        if ww == 1:
            return jnp.zeros_like(t)
        zc = jnp.zeros((t.shape[0], 1, c), jnp.float32)
        return jnp.concatenate([t[:, 1:, :], zc], axis=1)

    def mm(piece, widx):
        return jnp.dot(piece.reshape(tr * ww, c).astype(_MM_DTYPE),
                       w4_ref[widx], preferred_element_type=jnp.float32)

    nbr = nxt if tr == 1 else jnp.concatenate([cur[1:], nxt], axis=0)  # rows a+1
    y = mm(cur, 0) + b_ref[...]                  # taps fed by y(a,   b  )
    y = y + mm(shift_cols(cur), 1)               # taps fed by y(a,   b+1)
    y = y + mm(nbr, 2)                           # taps fed by y(a+1, b  )
    y = y + mm(shift_cols(nbr), 3)               # taps fed by y(a+1, b+1)

    s = jnp.sum(y, axis=0, keepdims=True)
    mu = s * (1.0 / (tr * ww))
    ssd = jnp.sum(jnp.square(y - mu), axis=0, keepdims=True)
    st_ref[...] = jnp.concatenate([s, ssd], axis=0)[None, None]
    y_ref[...] = y.astype(y_ref.dtype).reshape(1, tr, ww, d4)


# ----------------------------------------------------------------------------
# pallas_call wrappers (tiled, pipelined, megacore-parallel grid axes)
# ----------------------------------------------------------------------------
def _conv1x1_stats(x2d, w, b, *, budget, limit):
    m, kin = x2d.shape
    cout = w.shape[1]
    tm = _pick_tile_m(m, 16, 12 * (kin + cout), budget)
    nt = m // tm
    y, st = pl.pallas_call(
        _conv1x1_stats_kernel,
        out_shape=(jax.ShapeDtypeStruct((m, cout), _ACT_DTYPE),
                   jax.ShapeDtypeStruct((nt, 2, cout), jnp.float32)),
        grid=(nt,),
        in_specs=[pl.BlockSpec((tm, kin), lambda i: (i, 0)),
                  pl.BlockSpec((kin, cout), lambda i: (0, 0)),
                  pl.BlockSpec((1, cout), lambda i: (0, 0))],
        out_specs=(pl.BlockSpec((tm, cout), lambda i: (i, 0)),
                   pl.BlockSpec((1, 2, cout), lambda i: (i, 0, 0))),
        compiler_params=_compiler_params(("parallel",), limit),
    )(x2d, w, b.reshape(1, -1))
    return y, st, tm


def _bn_mm_stats(x2d, sc, sh, w, b, kernel, *, budget, limit, out_cols):
    m, kin = x2d.shape
    tm = _pick_tile_m(m, 16, 12 * (kin + out_cols), budget)
    nt = m // tm
    y, st = pl.pallas_call(
        kernel,
        out_shape=(jax.ShapeDtypeStruct((m, out_cols), _ACT_DTYPE),
                   jax.ShapeDtypeStruct((nt, 2, out_cols), jnp.float32)),
        grid=(nt,),
        in_specs=[pl.BlockSpec((tm, kin), lambda i: (i, 0)),
                  pl.BlockSpec((1, kin), lambda i: (0, 0)),
                  pl.BlockSpec((1, kin), lambda i: (0, 0)),
                  pl.BlockSpec(w.shape, lambda i: tuple(0 for _ in w.shape)),
                  pl.BlockSpec((1, out_cols), lambda i: (0, 0))],
        out_specs=(pl.BlockSpec((tm, out_cols), lambda i: (i, 0)),
                   pl.BlockSpec((1, 2, out_cols), lambda i: (i, 0, 0))),
        compiler_params=_compiler_params(("parallel",), limit),
    )(x2d, sc.reshape(1, -1), sh.reshape(1, -1), w, b.reshape(1, -1))
    return y, st, tm


def _deconv_phase(y1, sc, sh, w4, b4, *, budget, limit):
    n, h, ww, c = y1.shape
    d4 = b4.shape[-1]
    row_bytes = 80 * ww * c                      # in/out + in-kernel temporaries
    tr = _pick_tile_rows(h, n, row_bytes, budget)
    nrb = h // tr
    y2, st = pl.pallas_call(
        _deconv_phase_kernel,
        out_shape=(jax.ShapeDtypeStruct((n, h, ww, d4), _ACT_DTYPE),
                   jax.ShapeDtypeStruct((n, nrb, 2, d4), jnp.float32)),
        grid=(n, nrb),
        in_specs=[
            # current row-block of y1 (pre-BN, bf16)
            pl.BlockSpec((1, tr, ww, c), lambda i, r: (i, r, 0, 0)),
            # halo: first row of the next row-block (clamped; masked in-kernel)
            pl.BlockSpec((1, 1, ww, c),
                         lambda i, r: (i, jnp.minimum((r + 1) * tr, h - 1), 0, 0)),
            pl.BlockSpec((1, c), lambda i, r: (0, 0)),
            pl.BlockSpec((1, c), lambda i, r: (0, 0)),
            pl.BlockSpec((4, c, d4), lambda i, r: (0, 0, 0)),
            pl.BlockSpec((1, d4), lambda i, r: (0, 0)),
        ],
        out_specs=(pl.BlockSpec((1, tr, ww, d4), lambda i, r: (i, r, 0, 0)),
                   pl.BlockSpec((1, 1, 2, d4), lambda i, r: (i, r, 0, 0))),
        compiler_params=_compiler_params(("parallel", "parallel"), limit),
    )(y1, y1, sc.reshape(1, -1), sh.reshape(1, -1), w4, b4.reshape(1, -1))
    return y2, st, tr * ww


# ----------------------------------------------------------------------------
# BatchNorm (training-mode): combine per-group (sum, centered sum-of-squares)
# with Chan's parallel-variance formula (robust against cancellation).
# ----------------------------------------------------------------------------
def _bn_scale_shift(partials, rows_per_group, channels, gamma, beta):
    k = partials.shape[-1] // channels           # lane-groups * phases per tile
    p = partials.reshape(-1, 2, k, channels)
    sums = p[:, 0].reshape(-1, channels)
    ssds = p[:, 1].reshape(-1, channels)
    groups = sums.shape[0]
    total = groups * rows_per_group
    mu_g = sums / rows_per_group
    mu = jnp.sum(sums, axis=0) / total
    var = (jnp.sum(ssds, axis=0)
           + rows_per_group * jnp.sum(jnp.square(mu_g - mu), axis=0)) / total
    var = jnp.maximum(var, 0.0)                  # biased (training-mode) variance
    scale = gamma * jax.lax.rsqrt(var + _EPS)
    return scale, beta - mu * scale


# ----------------------------------------------------------------------------
# DecoderBlock forward
# ----------------------------------------------------------------------------
def init_decoder_block_params(key, in_channels, n_filters):
    c4 = in_channels // 4
    ks = jax.random.split(key, 6)
    return {
        # conv1: PyTorch weight (c4, Cin, 1, 1) stored here as matmul (Cin, c4)
        "w1": jax.random.normal(ks[0], (in_channels, c4), jnp.float32) * 0.1,
        "b1": jax.random.normal(ks[1], (c4,), jnp.float32) * 0.1,
        "g1": jnp.ones((c4,), jnp.float32) * 1.1,
        "be1": jnp.full((c4,), 0.05, jnp.float32),
        # deconv2: PyTorch ConvTranspose2d layout (Cin=c4, Cout=c4, 3, 3)
        "w2": jax.random.normal(ks[2], (c4, c4, 3, 3), jnp.float32) * 0.1,
        "b2": jax.random.normal(ks[3], (c4,), jnp.float32) * 0.1,
        "g2": jnp.ones((c4,), jnp.float32) * 0.9,
        "be2": jnp.full((c4,), -0.05, jnp.float32),
        # conv3: PyTorch weight (n_filters, c4, 1, 1) stored as matmul (c4, nf)
        "w3": jax.random.normal(ks[4], (c4, n_filters), jnp.float32) * 0.1,
        "b3": jax.random.normal(ks[5], (n_filters,), jnp.float32) * 0.1,
        "g3": jnp.ones((n_filters,), jnp.float32) * 1.05,
        "be3": jnp.full((n_filters,), 0.02, jnp.float32),
    }


@jax.jit
def decoder_block_forward(x_nchw, params):
    n, cin, h, w = x_nchw.shape
    c4 = params["w1"].shape[1]
    nf = params["w3"].shape[1]
    budget, limit = _vmem_limits()

    x = jnp.transpose(x_nchw, (0, 2, 3, 1)).astype(jnp.float32)   # NCHW -> NHWC
    m = n * h * w

    # ---- stage 1: conv1 (1x1) + BN1 partial stats ---------------------------
    # Lane-dense trick for narrow channels: group grp1 consecutive pixels per
    # row (free HBM reshape) and use a block-diagonal weight, so both the
    # loads and the bf16 stores are >= 128 lanes wide.
    grp1 = max(_lane_group(cin), _lane_group(c4))
    while grp1 > 1 and m % grp1:
        grp1 //= 2
    w1 = params["w1"]
    w1g = jnp.kron(jnp.eye(grp1, dtype=w1.dtype), w1) if grp1 > 1 else w1
    y1, st1, rows1 = _conv1x1_stats(
        x.reshape(m // grp1, grp1 * cin), w1g.astype(_MM_DTYPE),
        jnp.tile(params["b1"], grp1), budget=budget, limit=limit)
    sc1, sh1 = _bn_scale_shift(st1, rows1, c4, params["g1"], params["be1"])

    # ---- stage 2: BN1-apply + ReLU + transposed conv (phase decomposition)
    #               + BN2 partial stats, fused in one streaming kernel --------
    w2 = params["w2"]                       # (Cin, Cout, 3, 3) PyTorch layout

    def tap(ky, kx):                        # spatially flipped tap as (Cin, Cout)
        return w2[:, :, 2 - ky, 2 - kx]

    z = jnp.zeros((c4, c4), w2.dtype)
    # Phase (column-block) order: [EE, EO, OE, OO] == output pixel (2a+ry, 2b+rx)
    # with p = 2*ry + rx.  Row blocks correspond to the four input pieces
    # [y(a,b) | y(a,b+1) | y(a+1,b) | y(a+1,b+1)] accumulated in the kernel.
    w4 = jnp.block([
        [tap(1, 1), tap(1, 0), tap(0, 1), tap(0, 0)],
        [z,         tap(1, 2), z,         tap(0, 2)],
        [z,         z,         tap(2, 1), tap(2, 0)],
        [z,         z,         z,         tap(2, 2)],
    ]).reshape(4, c4, 4 * c4).astype(_MM_DTYPE)
    # TODO(synk): the phase-planar y2 store stays narrow when 4*c4 < 128
    # (shallowest blocks only); a lane-grouped layout there needs grouped
    # column shifts and was left out for simplicity.
    y2, st2, rows2 = _deconv_phase(y1.reshape(n, h, w, c4), sc1, sh1, w4,
                                   jnp.tile(params["b2"], 4),
                                   budget=budget, limit=limit)
    sc2, sh2 = _bn_scale_shift(st2, rows2, c4, params["g2"], params["be2"])

    # ---- stage 3: BN2-apply + ReLU + conv3 (1x1, per phase) + BN3 stats -----
    w3 = params["w3"]
    if (4 * c4) % 128 == 0 and (4 * nf) >= 128:
        # lane-aligned per-phase dots (deep blocks): no block-diagonal zeros
        y3, st3, rows3 = _bn_mm_stats(
            y2.reshape(m, 4 * c4), jnp.tile(sc2, 4), jnp.tile(sh2, 4),
            w3.astype(_MM_DTYPE), jnp.tile(params["b3"], 4),
            _bn_mm_stats_phase_kernel, budget=budget, limit=limit,
            out_cols=4 * nf)
    else:
        grp3 = max(_lane_group(4 * c4), _lane_group(4 * nf))
        while grp3 > 1 and m % grp3:
            grp3 //= 2
        w3g = jnp.kron(jnp.eye(4 * grp3, dtype=w3.dtype), w3)
        y3, st3, rows3 = _bn_mm_stats(
            y2.reshape(m // grp3, grp3 * 4 * c4),
            jnp.tile(sc2, 4 * grp3), jnp.tile(sh2, 4 * grp3),
            w3g.astype(_MM_DTYPE), jnp.tile(params["b3"], 4 * grp3),
            _bn_mm_stats_kernel, budget=budget, limit=limit,
            out_cols=grp3 * 4 * nf)
    sc3, sh3 = _bn_scale_shift(st3, rows3, nf, params["g3"], params["be3"])

    # ---- stage 4: BN3-apply + ReLU, fused by XLA into the single
    #               phase-planar -> NCHW depth-to-space (one read, one write) -
    y3f = y3.reshape(m, 4 * nf).astype(jnp.float32)
    out = jnp.maximum(y3f * jnp.tile(sc3, 4) + jnp.tile(sh3, 4), 0.0)
    out = out.reshape(n, h, w, 2, 2, nf)
    return jnp.transpose(out, (0, 5, 1, 3, 2, 4)).reshape(n, nf, 2 * h, 2 * w)


# ----------------------------------------------------------------------------
# Pure-JAX reference (independent math; same bf16-operand / f32-accumulate
# matmuls and the same bf16 storage of inter-stage activations; BN math f32)
# ----------------------------------------------------------------------------
def decoder_block_reference(x_nchw, p):
    def bn_relu_q(y, g, b):
        # stats from the f32 tensor (as the kernels do), applied to the bf16-
        # rounded copy the next stage actually reads from HBM
        mu = jnp.mean(y, axis=(0, 1, 2))
        var = jnp.mean(jnp.square(y - mu), axis=(0, 1, 2))
        scale = g * jax.lax.rsqrt(var + _EPS)
        shift = b - mu * scale
        yq = y.astype(_ACT_DTYPE).astype(jnp.float32)
        return jnp.maximum(yq * scale + shift, 0.0)

    x = jnp.transpose(x_nchw, (0, 2, 3, 1)).astype(jnp.float32)
    y = jnp.einsum("nhwc,cd->nhwd", x.astype(_MM_DTYPE),
                   p["w1"].astype(_MM_DTYPE),
                   preferred_element_type=jnp.float32) + p["b1"]
    y = bn_relu_q(y, p["g1"], p["be1"])
    # ConvTranspose2d == lhs-dilated conv with spatially flipped kernel, pad (1,2)
    w2f = jnp.transpose(p["w2"][:, :, ::-1, ::-1], (2, 3, 0, 1))   # HWIO
    y = jax.lax.conv_general_dilated(
        y.astype(_MM_DTYPE), w2f.astype(_MM_DTYPE),
        window_strides=(1, 1), padding=[(1, 2), (1, 2)],
        lhs_dilation=(2, 2), rhs_dilation=(1, 1),
        dimension_numbers=("NHWC", "HWIO", "NHWC"),
        preferred_element_type=jnp.float32) + p["b2"]
    y = bn_relu_q(y, p["g2"], p["be2"])
    y = jnp.einsum("nhwc,cd->nhwd", y.astype(_MM_DTYPE),
                   p["w3"].astype(_MM_DTYPE),
                   preferred_element_type=jnp.float32) + p["b3"]
    y = bn_relu_q(y, p["g3"], p["be3"])
    return jnp.transpose(y, (0, 3, 1, 2))


if __name__ == "__main__":
    in_channels, n_filters = 16, 8
    N, H, W = 2, 8, 8

    key = jax.random.PRNGKey(0)
    kx, kp = jax.random.split(key)
    x = jax.random.normal(kx, (N, in_channels, H, W), jnp.float32)
    params = init_decoder_block_params(kp, in_channels, n_filters)

    out = jax.block_until_ready(decoder_block_forward(x, params))

    assert out.shape == (N, n_filters, 2 * H, 2 * W), out.shape
    assert bool(jnp.all(jnp.isfinite(out)))

    ref = decoder_block_reference(x, params)
    err = float(jnp.max(jnp.abs(out - ref)))
    assert err < 2e-2, f"max abs error vs reference: {err}"

    print("KERNEL_OK")
</pallas_src>

<mosaic_0001>
module attributes {stable_mosaic.version = 11 : i64} {
  func.func @_conv1x1_stats_kernel(%arg0: i32, %arg1: memref<4x512xf32, #tpu.memory_space<vmem>>, %arg2: memref<512x128xbf16, #tpu.memory_space<vmem>>, %arg3: memref<1x128xf32, #tpu.memory_space<vmem>>, %arg4: memref<4x128xbf16, #tpu.memory_space<vmem>>, %arg5: memref<1x2x128xf32, #tpu.memory_space<vmem>>) attributes {dimension_semantics = [#tpu.dimension_semantics<parallel>], iteration_bounds = array<i64: 1>, scalar_prefetch = 0 : i64, scratch_operands = 0 : i64, tpu.core_type = #tpu.core_type<tc>, window_params = [{transform_indices = @transform_0, window_bounds = array<i64: 4, 512>}, {pipeline_mode = #tpu.pipeline_mode<synchronous>, transform_indices = @transform_1, window_bounds = array<i64: 512, 128>}, {pipeline_mode = #tpu.pipeline_mode<synchronous>, transform_indices = @transform_2, window_bounds = array<i64: 1, 128>}, {transform_indices = @transform_3, window_bounds = array<i64: 4, 128>}, {transform_indices = @transform_4, window_bounds = array<i64: 1, 2, 128>}]} {
    %c0 = arith.constant 0 : index
    %c0_0 = arith.constant 0 : index
    %0 = vector.load %arg1[%c0, %c0_0] : memref<4x512xf32, #tpu.memory_space<vmem>>, vector<4x512xf32>
    %1 = arith.truncf %0 : vector<4x512xf32> to vector<4x512xbf16>
    %c0_1 = arith.constant 0 : index
    %c0_2 = arith.constant 0 : index
    %2 = vector.load %arg2[%c0_1, %c0_2] : memref<512x128xbf16, #tpu.memory_space<vmem>>, vector<512x128xbf16>
    %cst = arith.constant dense<0.000000e+00> : vector<4x128xf32>
    %3 = tpu.matmul %1, %2, %cst {dimension_numbers = #tpu.dot_dimension_numbers<[1], [0], [0], [1], [0, 0, 1, 1], [], []>} : vector<4x512xbf16>, vector<512x128xbf16>, vector<4x128xf32> -> vector<4x128xf32>
    %c0_3 = arith.constant 0 : index
    %c0_4 = arith.constant 0 : index
    %4 = vector.load %arg3[%c0_3, %c0_4] : memref<1x128xf32, #tpu.memory_space<vmem>>, vector<1x128xf32>
    %5 = vector.broadcast %4 : vector<1x128xf32> to vector<4x128xf32>
    %6 = arith.addf %3, %5 : vector<4x128xf32>
    %cst_5 = arith.constant dense<0.000000e+00> : vector<128xf32>
    %7 = vector.multi_reduction <add>, %6, %cst_5 [0] : vector<4x128xf32> to vector<128xf32>
    %8 = vector.shape_cast %7 : vector<128xf32> to vector<1x128xf32>
    %cst_6 = arith.constant 2.500000e-01 : f32
    %9 = vector.broadcast %cst_6 : f32 to vector<1x128xf32>
    %10 = arith.mulf %8, %9 : vector<1x128xf32>
    %11 = vector.broadcast %10 : vector<1x128xf32> to vector<4x128xf32>
    %12 = arith.subf %6, %11 : vector<4x128xf32>
    %13 = arith.mulf %12, %12 : vector<4x128xf32>
    %cst_7 = arith.constant dense<0.000000e+00> : vector<128xf32>
    %14 = vector.multi_reduction <add>, %13, %cst_7 [0] : vector<4x128xf32> to vector<128xf32>
    %15 = vector.shape_cast %14 : vector<128xf32> to vector<1x128xf32>
    %16 = tpu.concatenate %8, %15 in 0 : vector<1x128xf32>, vector<1x128xf32> -> vector<2x128xf32>
    %17 = vector.shape_cast %16 : vector<2x128xf32> to vector<1x2x128xf32>
    %c0_8 = arith.constant 0 : index
    %c0_9 = arith.constant 0 : index
    %c0_10 = arith.constant 0 : index
    %18 = vector.load %arg5[%c0_8, %c0_9, %c0_10] : memref<1x2x128xf32, #tpu.memory_space<vmem>>, vector<1x2x128xf32>
    tpu.vector_store %arg5[%c0_8, %c0_9, %c0_10], %17 {strides = array<i32>} : memref<1x2x128xf32, #tpu.memory_space<vmem>>, vector<1x2x128xf32>,
    %19 = arith.truncf %6 : vector<4x128xf32> to vector<4x128xbf16>
    %c0_11 = arith.constant 0 : index
    %c0_12 = arith.constant 0 : index
    %20 = vector.load %arg4[%c0_11, %c0_12] : memref<4x128xbf16, #tpu.memory_space<vmem>>, vector<4x128xbf16>
    tpu.vector_store %arg4[%c0_11, %c0_12], %19 {strides = array<i32>} : memref<4x128xbf16, #tpu.memory_space<vmem>>, vector<4x128xbf16>,
    return
  }
  func.func @transform_0(%arg0: i32) -> (i32, i32) {
    %c0_i32 = arith.constant 0 : i32
    %c0_i32_0 = arith.constant 0 : i32
    return %arg0, %c0_i32 : i32, i32
  }
  func.func @transform_1(%arg0: i32) -> (i32, i32) {
    %c0_i32 = arith.constant 0 : i32
    %c0_i32_0 = arith.constant 0 : i32
    %c0_i32_1 = arith.constant 0 : i32
    return %c0_i32, %c0_i32_0 : i32, i32
  }
  func.func @transform_2(%arg0: i32) -> (i32, i32) {
    %c0_i32 = arith.constant 0 : i32
    %c0_i32_0 = arith.constant 0 : i32
    %c0_i32_1 = arith.constant 0 : i32
    return %c0_i32, %c0_i32_0 : i32, i32
  }
  func.func @transform_3(%arg0: i32) -> (i32, i32) {
    %c0_i32 = arith.constant 0 : i32
    %c0_i32_0 = arith.constant 0 : i32
    return %arg0, %c0_i32 : i32, i32
  }
  func.func @transform_4(%arg0: i32) -> (i32, i32, i32) {
    %c0_i32 = arith.constant 0 : i32
    %c0_i32_0 = arith.constant 0 : i32
    %c0_i32_1 = arith.constant 0 : i32
    return %arg0, %c0_i32, %c0_i32_0 : i32, i32, i32
  }
}

module attributes {stable_mosaic.version = 11 : i64} {
  func.func @_deconv_phase_kernel(%arg0: i32, %arg1: i32, %arg2: memref<1x8x8x4xbf16, #tpu.memory_space<vmem>>, %arg3: memref<1x1x8x4xbf16, #tpu.memory_space<vmem>>, %arg4: memref<1x4xf32, #tpu.memory_space<vmem>>, %arg5: memref<1x4xf32, #tpu.memory_space<vmem>>, %arg6: memref<4x4x16xbf16, #tpu.memory_space<vmem>>, %arg7: memref<1x16xf32, #tpu.memory_space<vmem>>, %arg8: memref<1x8x8x16xbf16, #tpu.memory_space<vmem>>, %arg9: memref<1x1x2x16xf32, #tpu.memory_space<vmem>>) attributes {dimension_semantics = [#tpu.dimension_semantics<parallel>, #tpu.dimension_semantics<parallel>], iteration_bounds = array<i64: 2, 1>, scalar_prefetch = 0 : i64, scratch_operands = 0 : i64, tpu.core_type = #tpu.core_type<tc>, window_params = [{transform_indices = @transform_0, window_bounds = array<i64: 1, 8, 8, 4>}, {transform_indices = @transform_1, window_bounds = array<i64: 1, 1, 8, 4>}, {pipeline_mode = #tpu.pipeline_mode<synchronous>, transform_indices = @transform_2, window_bounds = array<i64: 1, 4>}, {pipeline_mode = #tpu.pipeline_mode<synchronous>, transform_indices = @transform_3, window_bounds = array<i64: 1, 4>}, {pipeline_mode = #tpu.pipeline_mode<synchronous>, transform_indices = @transform_4, window_bounds = array<i64: 4, 4, 16>}, {pipeline_mode = #tpu.pipeline_mode<synchronous>, transform_indices = @transform_5, window_bounds = array<i64: 1, 16>}, {transform_indices = @transform_6, window_bounds = array<i64: 1, 8, 8, 16>}, {transform_indices = @transform_7, window_bounds = array<i64: 1, 1, 2, 16>}]} {
    %c0 = arith.constant 0 : index
    %c0_0 = arith.constant 0 : index
    %0 = vector.load %arg4[%c0, %c0_0] : memref<1x4xf32, #tpu.memory_space<vmem>>, vector<1x4xf32>
    %c0_1 = arith.constant 0 : index
    %c0_2 = arith.constant 0 : index
    %1 = vector.load %arg5[%c0_1, %c0_2] : memref<1x4xf32, #tpu.memory_space<vmem>>, vector<1x4xf32>
    %c0_3 = arith.constant 0 : index
    %c0_4 = arith.constant 0 : index
    %c0_5 = arith.constant 0 : index
    %c0_6 = arith.constant 0 : index
    %2 = vector.load %arg2[%c0_3, %c0_4, %c0_5, %c0_6] : memref<1x8x8x4xbf16, #tpu.memory_space<vmem>>, vector<1x8x8x4xbf16>
    %3 = vector.shape_cast %2 : vector<1x8x8x4xbf16> to vector<8x8x4xbf16>
    %4 = arith.extf %3 : vector<8x8x4xbf16> to vector<8x8x4xf32>
    %5 = vector.shape_cast %0 : vector<1x4xf32> to vector<1x1x4xf32>
    %6 = vector.broadcast %5 : vector<1x1x4xf32> to vector<8x8x4xf32>
    %7 = arith.mulf %4, %6 : vector<8x8x4xf32>
    %8 = vector.shape_cast %1 : vector<1x4xf32> to vector<1x1x4xf32>
    %9 = vector.broadcast %8 : vector<1x1x4xf32> to vector<8x8x4xf32>
    %10 = arith.addf %7, %9 : vector<8x8x4xf32>
    %cst = arith.constant 0.000000e+00 : f32
    %11 = vector.broadcast %cst : f32 to vector<8x8x4xf32>
    %12 = arith.maximumf %10, %11 : vector<8x8x4xf32>
    %c0_7 = arith.constant 0 : index
    %c0_8 = arith.constant 0 : index
    %c0_9 = arith.constant 0 : index
    %c0_10 = arith.constant 0 : index
    %13 = vector.load %arg3[%c0_7, %c0_8, %c0_9, %c0_10] : memref<1x1x8x4xbf16, #tpu.memory_space<vmem>>, vector<1x1x8x4xbf16>
    %14 = vector.shape_cast %13 : vector<1x1x8x4xbf16> to vector<1x8x4xbf16>
    %15 = arith.extf %14 : vector<1x8x4xbf16> to vector<1x8x4xf32>
    %16 = vector.shape_cast %0 : vector<1x4xf32> to vector<1x1x4xf32>
    %17 = vector.broadcast %16 : vector<1x1x4xf32> to vector<1x8x4xf32>
    %18 = arith.mulf %15, %17 : vector<1x8x4xf32>
    %19 = vector.shape_cast %1 : vector<1x4xf32> to vector<1x1x4xf32>
    %20 = vector.broadcast %19 : vector<1x1x4xf32> to vector<1x8x4xf32>
    %21 = arith.addf %18, %20 : vector<1x8x4xf32>
    %cst_11 = arith.constant 0.000000e+00 : f32
    %22 = vector.broadcast %cst_11 : f32 to vector<1x8x4xf32>
    %23 = arith.maximumf %21, %22 : vector<1x8x4xf32>
    %c0_i32 = arith.constant 0 : i32
    %24 = arith.cmpi eq, %arg1, %c0_i32 : i32
    %cst_12 = arith.constant 0.000000e+00 : f32
    %cst_13 = arith.constant 1.000000e+00 : f32
    %25 = arith.select %24, %cst_12, %cst_13 : f32
    %26 = vector.broadcast %25 : f32 to vector<1x8x4xf32>
    %27 = arith.mulf %23, %26 : vector<1x8x4xf32>
    %28 = vector.extract_strided_slice %12 {offsets = [1, 0, 0], sizes = [7, 8, 4], strides = [1, 1, 1]} : vector<8x8x4xf32> to vector<7x8x4xf32>
    %29 = tpu.concatenate %28, %27 in 0 : vector<7x8x4xf32>, vector<1x8x4xf32> -> vector<8x8x4xf32>
    %30 = vector.shape_cast %12 : vector<8x8x4xf32> to vector<64x4xf32>
    %31 = arith.truncf %30 : vector<64x4xf32> to vector<64x4xbf16>
    %c0_14 = arith.constant 0 : index
    %c0_15 = arith.constant 0 : index
    %c0_16 = arith.constant 0 : index
    %32 = vector.load %arg6[%c0_14, %c0_15, %c0_16] : memref<4x4x16xbf16, #tpu.memory_space<vmem>>, vector<1x4x16xbf16>
    %33 = vector.shape_cast %32 : vector<1x4x16xbf16> to vector<4x16xbf16>
    %cst_17 = arith.constant dense<0.000000e+00> : vector<64x16xf32>
    %34 = tpu.matmul %31, %33, %cst_17 {dimension_numbers = #tpu.dot_dimension_numbers<[1], [0], [0], [1], [0, 0, 1, 1], [], []>} : vector<64x4xbf16>, vector<4x16xbf16>, vector<64x16xf32> -> vector<64x16xf32>
    %c0_18 = arith.constant 0 : index
    %c0_19 = arith.constant 0 : index
    %35 = vector.load %arg7[%c0_18, %c0_19] : memref<1x16xf32, #tpu.memory_space<vmem>>, vector<1x16xf32>
    %36 = vector.broadcast %35 : vector<1x16xf32> to vector<64x16xf32>
    %37 = arith.addf %34, %36 : vector<64x16xf32>
    %cst_20 = arith.constant 0.000000e+00 : f32
    %38 = vector.broadcast %cst_20 : f32 to vector<8x1x4xf32>
    %39 = vector.extract_strided_slice %12 {offsets = [0, 1, 0], sizes = [8, 7, 4], strides = [1, 1, 1]} : vector<8x8x4xf32> to vector<8x7x4xf32>
    %40 = tpu.concatenate %39, %38 in 1 : vector<8x7x4xf32>, vector<8x1x4xf32> -> vector<8x8x4xf32>
    %41 = vector.shape_cast %40 : vector<8x8x4xf32> to vector<64x4xf32>
    %42 = arith.truncf %41 : vector<64x4xf32> to vector<64x4xbf16>
    %c1 = arith.constant 1 : index
    %c0_21 = arith.constant 0 : index
    %c0_22 = arith.constant 0 : index
    %43 = vector.load %arg6[%c1, %c0_21, %c0_22] : memref<4x4x16xbf16, #tpu.memory_space<vmem>>, vector<1x4x16xbf16>
    %44 = vector.shape_cast %43 : vector<1x4x16xbf16> to vector<4x16xbf16>
    %cst_23 = arith.constant dense<0.000000e+00> : vector<64x16xf32>
    %45 = tpu.matmul %42, %44, %cst_23 {dimension_numbers = #tpu.dot_dimension_numbers<[1], [0], [0], [1], [0, 0, 1, 1], [], []>} : vector<64x4xbf16>, vector<4x16xbf16>, vector<64x16xf32> -> vector<64x16xf32>
    %46 = arith.addf %37, %45 : vector<64x16xf32>
    %47 = vector.shape_cast %29 : vector<8x8x4xf32> to vector<64x4xf32>
    %48 = arith.truncf %47 : vector<64x4xf32> to vector<64x4xbf16>
    %c2 = arith.constant 2 : index
    %c0_24 = arith.constant 0 : index
    %c0_25 = arith.constant 0 : index
    %49 = vector.load %arg6[%c2, %c0_24, %c0_25] : memref<4x4x16xbf16, #tpu.memory_space<vmem>>, vector<1x4x16xbf16>
    %50 = vector.shape_cast %49 : vector<1x4x16xbf16> to vector<4x16xbf16>
    %cst_26 = arith.constant dense<0.000000e+00> : vector<64x16xf32>
    %51 = tpu.matmul %48, %50, %cst_26 {dimension_numbers = #tpu.dot_dimension_numbers<[1], [0], [0], [1], [0, 0, 1, 1], [], []>} : vector<64x4xbf16>, vector<4x16xbf16>, vector<64x16xf32> -> vector<64x16xf32>
    %52 = arith.addf %46, %51 : vector<64x16xf32>
    %cst_27 = arith.constant 0.000000e+00 : f32
    %53 = vector.broadcast %cst_27 : f32 to vector<8x1x4xf32>
    %54 = vector.extract_strided_slice %29 {offsets = [0, 1, 0], sizes = [8, 7, 4], strides = [1, 1, 1]} : vector<8x8x4xf32> to vector<8x7x4xf32>
    %55 = tpu.concatenate %54, %53 in 1 : vector<8x7x4xf32>, vector<8x1x4xf32> -> vector<8x8x4xf32>
    %56 = vector.shape_cast %55 : vector<8x8x4xf32> to vector<64x4xf32>
    %57 = arith.truncf %56 : vector<64x4xf32> to vector<64x4xbf16>
    %c3 = arith.constant 3 : index
    %c0_28 = arith.constant 0 : index
    %c0_29 = arith.constant 0 : index
    %58 = vector.load %arg6[%c3, %c0_28, %c0_29] : memref<4x4x16xbf16, #tpu.memory_space<vmem>>, vector<1x4x16xbf16>
    %59 = vector.shape_cast %58 : vector<1x4x16xbf16> to vector<4x16xbf16>
    %cst_30 = arith.constant dense<0.000000e+00> : vector<64x16xf32>
    %60 = tpu.matmul %57, %59, %cst_30 {dimension_numbers = #tpu.dot_dimension_numbers<[1], [0], [0], [1], [0, 0, 1, 1], [], []>} : vector<64x4xbf16>, vector<4x16xbf16>, vector<64x16xf32> -> vector<64x16xf32>
    %61 = arith.addf %52, %60 : vector<64x16xf32>
    %cst_31 = arith.constant dense<0.000000e+00> : vector<16xf32>
    %62 = vector.multi_reduction <add>, %61, %cst_31 [0] : vector<64x16xf32> to vector<16xf32>
    %63 = vector.shape_cast %62 : vector<16xf32> to vector<1x16xf32>
    %cst_32 = arith.constant 1.562500e-02 : f32
    %64 = vector.broadcast %cst_32 : f32 to vector<1x16xf32>
    %65 = arith.mulf %63, %64 : vector<1x16xf32>
    %66 = vector.broadcast %65 : vector<1x16xf32> to vector<64x16xf32>
    %67 = arith.subf %61, %66 : vector<64x16xf32>
    %68 = arith.mulf %67, %67 : vector<64x16xf32>
    %cst_33 = arith.constant dense<0.000000e+00> : vector<16xf32>
    %69 = vector.multi_reduction <add>, %68, %cst_33 [0] : vector<64x16xf32> to vector<16xf32>
    %70 = vector.shape_cast %69 : vector<16xf32> to vector<1x16xf32>
    %71 = tpu.concatenate %63, %70 in 0 : vector<1x16xf32>, vector<1x16xf32> -> vector<2x16xf32>
    %72 = vector.shape_cast %71 : vector<2x16xf32> to vector<1x1x2x16xf32>
    %c0_34 = arith.constant 0 : index
    %c0_35 = arith.constant 0 : index
    %c0_36 = arith.constant 0 : index
    %c0_37 = arith.constant 0 : index
    %73 = vector.load %arg9[%c0_34, %c0_35, %c0_36, %c0_37] : memref<1x1x2x16xf32, #tpu.memory_space<vmem>>, vector<1x1x2x16xf32>
    tpu.vector_store %arg9[%c0_34, %c0_35, %c0_36, %c0_37], %72 {strides = array<i32>} : memref<1x1x2x16xf32, #tpu.memory_space<vmem>>, vector<1x1x2x16xf32>,
    %74 = arith.truncf %61 : vector<64x16xf32> to vector<64x16xbf16>
    %75 = vector.shape_cast %74 : vector<64x16xbf16> to vector<1x8x8x16xbf16>
    %c0_38 = arith.constant 0 : index
    %c0_39 = arith.constant 0 : index
    %c0_40 = arith.constant 0 : index
    %c0_41 = arith.constant 0 : index
    %76 = vector.load %arg8[%c0_38, %c0_39, %c0_40, %c0_41] : memref<1x8x8x16xbf16, #tpu.memory_space<vmem>>, vector<1x8x8x16xbf16>
    tpu.vector_store %arg8[%c0_38, %c0_39, %c0_40, %c0_41], %75 {strides = array<i32>} : memref<1x8x8x16xbf16, #tpu.memory_space<vmem>>, vector<1x8x8x16xbf16>,
    return
  }
  func.func @transform_0(%arg0: i32, %arg1: i32) -> (i32, i32, i32, i32) {
    %c0_i32 = arith.constant 0 : i32
    %c0_i32_0 = arith.constant 0 : i32
    %c0_i32_1 = arith.constant 0 : i32
    return %arg0, %arg1, %c0_i32, %c0_i32_0 : i32, i32, i32, i32
  }
  func.func @transform_1(%arg0: i32, %arg1: i32) -> (i32, i32, i32, i32) {
    %c1_i32 = arith.constant 1 : i32
    %0 = arith.addi %arg1, %c1_i32 : i32
    %c8_i32 = arith.constant 8 : i32
    %1 = arith.muli %0, %c8_i32 : i32
    %c7_i32 = arith.constant 7 : i32
    %2 = arith.minsi %1, %c7_i32 : i32
    %c0_i32 = arith.constant 0 : i32
    %c0_i32_0 = arith.constant 0 : i32
    %c0_i32_1 = arith.constant 0 : i32
    return %arg0, %2, %c0_i32, %c0_i32_0 : i32, i32, i32, i32
  }
  func.func @transform_2(%arg0: i32, %arg1: i32) -> (i32, i32) {
    %c0_i32 = arith.constant 0 : i32
    %c0_i32_0 = arith.constant 0 : i32
    %c0_i32_1 = arith.constant 0 : i32
    return %c0_i32, %c0_i32_0 : i32, i32
  }
  func.func @transform_3(%arg0: i32, %arg1: i32) -> (i32, i32) {
    %c0_i32 = arith.constant 0 : i32
    %c0_i32_0 = arith.constant 0 : i32
    %c0_i32_1 = arith.constant 0 : i32
    return %c0_i32, %c0_i32_0 : i32, i32
  }
  func.func @transform_4(%arg0: i32, %arg1: i32) -> (i32, i32, i32) {
    %c0_i32 = arith.constant 0 : i32
    %c0_i32_0 = arith.constant 0 : i32
    %c0_i32_1 = arith.constant 0 : i32
    %c0_i32_2 = arith.constant 0 : i32
    return %c0_i32, %c0_i32_0, %c0_i32_1 : i32, i32, i32
  }
  func.func @transform_5(%arg0: i32, %arg1: i32) -> (i32, i32) {
    %c0_i32 = arith.constant 0 : i32
    %c0_i32_0 = arith.constant 0 : i32
    %c0_i32_1 = arith.constant 0 : i32
    return %c0_i32, %c0_i32_0 : i32, i32
  }
  func.func @transform_6(%arg0: i32, %arg1: i32) -> (i32, i32, i32, i32) {
    %c0_i32 = arith.constant 0 : i32
    %c0_i32_0 = arith.constant 0 : i32
    %c0_i32_1 = arith.constant 0 : i32
    return %arg0, %arg1, %c0_i32, %c0_i32_0 : i32, i32, i32, i32
  }
  func.func @transform_7(%arg0: i32, %arg1: i32) -> (i32, i32, i32, i32) {
    %c0_i32 = arith.constant 0 : i32
    %c0_i32_0 = arith.constant 0 : i32
    %c0_i32_1 = arith.constant 0 : i32
    return %arg0, %arg1, %c0_i32, %c0_i32_0 : i32, i32, i32, i32
  }
}

module attributes {stable_mosaic.version = 11 : i64} {
  func.func @_bn_mm_stats_kernel(%arg0: i32, %arg1: memref<16x128xbf16, #tpu.memory_space<vmem>>, %arg2: memref<1x128xf32, #tpu.memory_space<vmem>>, %arg3: memref<1x128xf32, #tpu.memory_space<vmem>>, %arg4: memref<128x256xbf16, #tpu.memory_space<vmem>>, %arg5: memref<1x256xf32, #tpu.memory_space<vmem>>, %arg6: memref<16x256xbf16, #tpu.memory_space<vmem>>, %arg7: memref<1x2x256xf32, #tpu.memory_space<vmem>>) attributes {dimension_semantics = [#tpu.dimension_semantics<parallel>], iteration_bounds = array<i64: 1>, scalar_prefetch = 0 : i64, scratch_operands = 0 : i64, tpu.core_type = #tpu.core_type<tc>, window_params = [{transform_indices = @transform_0, window_bounds = array<i64: 16, 128>}, {pipeline_mode = #tpu.pipeline_mode<synchronous>, transform_indices = @transform_1, window_bounds = array<i64: 1, 128>}, {pipeline_mode = #tpu.pipeline_mode<synchronous>, transform_indices = @transform_2, window_bounds = array<i64: 1, 128>}, {pipeline_mode = #tpu.pipeline_mode<synchronous>, transform_indices = @transform_3, window_bounds = array<i64: 128, 256>}, {pipeline_mode = #tpu.pipeline_mode<synchronous>, transform_indices = @transform_4, window_bounds = array<i64: 1, 256>}, {transform_indices = @transform_5, window_bounds = array<i64: 16, 256>}, {transform_indices = @transform_6, window_bounds = array<i64: 1, 2, 256>}]} {
    %c0 = arith.constant 0 : index
    %c0_0 = arith.constant 0 : index
    %0 = vector.load %arg1[%c0, %c0_0] : memref<16x128xbf16, #tpu.memory_space<vmem>>, vector<16x128xbf16>
    %1 = arith.extf %0 : vector<16x128xbf16> to vector<16x128xf32>
    %c0_1 = arith.constant 0 : index
    %c0_2 = arith.constant 0 : index
    %2 = vector.load %arg2[%c0_1, %c0_2] : memref<1x128xf32, #tpu.memory_space<vmem>>, vector<1x128xf32>
    %3 = vector.broadcast %2 : vector<1x128xf32> to vector<16x128xf32>
    %4 = arith.mulf %1, %3 : vector<16x128xf32>
    %c0_3 = arith.constant 0 : index
    %c0_4 = arith.constant 0 : index
    %5 = vector.load %arg3[%c0_3, %c0_4] : memref<1x128xf32, #tpu.memory_space<vmem>>, vector<1x128xf32>
    %6 = vector.broadcast %5 : vector<1x128xf32> to vector<16x128xf32>
    %7 = arith.addf %4, %6 : vector<16x128xf32>
    %cst = arith.constant 0.000000e+00 : f32
    %8 = vector.broadcast %cst : f32 to vector<16x128xf32>
    %9 = arith.maximumf %7, %8 : vector<16x128xf32>
    %10 = arith.truncf %9 : vector<16x128xf32> to vector<16x128xbf16>
    %c0_5 = arith.constant 0 : index
    %c0_6 = arith.constant 0 : index
    %11 = vector.load %arg4[%c0_5, %c0_6] : memref<128x256xbf16, #tpu.memory_space<vmem>>, vector<128x256xbf16>
    %cst_7 = arith.constant dense<0.000000e+00> : vector<16x256xf32>
    %12 = tpu.matmul %10, %11, %cst_7 {dimension_numbers = #tpu.dot_dimension_numbers<[1], [0], [0], [1], [0, 0, 1, 1], [], []>} : vector<16x128xbf16>, vector<128x256xbf16>, vector<16x256xf32> -> vector<16x256xf32>
    %c0_8 = arith.constant 0 : index
    %c0_9 = arith.constant 0 : index
    %13 = vector.load %arg5[%c0_8, %c0_9] : memref<1x256xf32, #tpu.memory_space<vmem>>, vector<1x256xf32>
    %14 = vector.broadcast %13 : vector<1x256xf32> to vector<16x256xf32>
    %15 = arith.addf %12, %14 : vector<16x256xf32>
    %cst_10 = arith.constant dense<0.000000e+00> : vector<256xf32>
    %16 = vector.multi_reduction <add>, %15, %cst_10 [0] : vector<16x256xf32> to vector<256xf32>
    %17 = vector.shape_cast %16 : vector<256xf32> to vector<1x256xf32>
    %cst_11 = arith.constant 6.250000e-02 : f32
    %18 = vector.broadcast %cst_11 : f32 to vector<1x256xf32>
    %19 = arith.mulf %17, %18 : vector<1x256xf32>
    %20 = vector.broadcast %19 : vector<1x256xf32> to vector<16x256xf32>
    %21 = arith.subf %15, %20 : vector<16x256xf32>
    %22 = arith.mulf %21, %21 : vector<16x256xf32>
    %cst_12 = arith.constant dense<0.000000e+00> : vector<256xf32>
    %23 = vector.multi_reduction <add>, %22, %cst_12 [0] : vector<16x256xf32> to vector<256xf32>
    %24 = vector.shape_cast %23 : vector<256xf32> to vector<1x256xf32>
    %25 = tpu.concatenate %17, %24 in 0 : vector<1x256xf32>, vector<1x256xf32> -> vector<2x256xf32>
    %26 = vector.shape_cast %25 : vector<2x256xf32> to vector<1x2x256xf32>
    %c0_13 = arith.constant 0 : index
    %c0_14 = arith.constant 0 : index
    %c0_15 = arith.constant 0 : index
    %27 = vector.load %arg7[%c0_13, %c0_14, %c0_15] : memref<1x2x256xf32, #tpu.memory_space<vmem>>, vector<1x2x256xf32>
    tpu.vector_store %arg7[%c0_13, %c0_14, %c0_15], %26 {strides = array<i32>} : memref<1x2x256xf32, #tpu.memory_space<vmem>>, vector<1x2x256xf32>,
    %28 = arith.truncf %15 : vector<16x256xf32> to vector<16x256xbf16>
    %c0_16 = arith.constant 0 : index
    %c0_17 = arith.constant 0 : index
    %29 = vector.load %arg6[%c0_16, %c0_17] : memref<16x256xbf16, #tpu.memory_space<vmem>>, vector<16x256xbf16>
    tpu.vector_store %arg6[%c0_16, %c0_17], %28 {strides = array<i32>} : memref<16x256xbf16, #tpu.memory_space<vmem>>, vector<16x256xbf16>,
    return
  }
  func.func @transform_0(%arg0: i32) -> (i32, i32) {
    %c0_i32 = arith.constant 0 : i32
    %c0_i32_0 = arith.constant 0 : i32
    return %arg0, %c0_i32 : i32, i32
  }
  func.func @transform_1(%arg0: i32) -> (i32, i32) {
    %c0_i32 = arith.constant 0 : i32
    %c0_i32_0 = arith.constant 0 : i32
    %c0_i32_1 = arith.constant 0 : i32
    return %c0_i32, %c0_i32_0 : i32, i32
  }
  func.func @transform_2(%arg0: i32) -> (i32, i32) {
    %c0_i32 = arith.constant 0 : i32
    %c0_i32_0 = arith.constant 0 : i32
    %c0_i32_1 = arith.constant 0 : i32
    return %c0_i32, %c0_i32_0 : i32, i32
  }
  func.func @transform_3(%arg0: i32) -> (i32, i32) {
    %c0_i32 = arith.constant 0 : i32
    %c0_i32_0 = arith.constant 0 : i32
    %c0_i32_1 = arith.constant 0 : i32
    return %c0_i32, %c0_i32_0 : i32, i32
  }
  func.func @transform_4(%arg0: i32) -> (i32, i32) {
    %c0_i32 = arith.constant 0 : i32
    %c0_i32_0 = arith.constant 0 : i32
    %c0_i32_1 = arith.constant 0 : i32
    return %c0_i32, %c0_i32_0 : i32, i32
  }
  func.func @transform_5(%arg0: i32) -> (i32, i32) {
    %c0_i32 = arith.constant 0 : i32
    %c0_i32_0 = arith.constant 0 : i32
    return %arg0, %c0_i32 : i32, i32
  }
  func.func @transform_6(%arg0: i32) -> (i32, i32, i32) {
    %c0_i32 = arith.constant 0 : i32
    %c0_i32_0 = arith.constant 0 : i32
    %c0_i32_1 = arith.constant 0 : i32
    return %arg0, %c0_i32, %c0_i32_0 : i32, i32, i32
  }
}

</mosaic_0001>

<bundles_post_ra>
// kernel: tile.38
= control target key start
LH: loop header
LB: loop body
LE: loop exit
PB: predicated region body
PF: predicated region fallthrough
CT: control target
= control target key end

     0   :  { %s40_s0 = inlined_call_operand.vmem [shape: f32[4], index: 0, kind: input, shape index: {}]   ;;  %s41_s1 = inlined_call_operand.vmem [shape: f32[32,4], index: 1, kind: output, shape index: {}]  }
   0x1   :  { %v4_v0 = vld [vmem:[%s40_s0] ss:$0 sm:$0xff] }
   0x2   :  { %5 = vst [vmem:[%s41_s1] sm:$0xff] %v4_v0  ;;  %12 = vst [vmem:[%s41_s1 + $0x8] sm:$0xff] %v4_v0 }
   0x3   :  { %13 = vst [vmem:[%s41_s1 + $0x10] sm:$0xff] %v4_v0  ;;  %14 = vst [vmem:[%s41_s1 + $0x18] sm:$0xff] %v4_v0 }

// kernel: tile.39
= control target key start
LH: loop header
LB: loop body
LE: loop exit
PB: predicated region body
PF: predicated region fallthrough
CT: control target
= control target key end

     0   :  { %s261_s10 = smov 124   ;;  %s262_s11 = smov 116   ;;  %vm3_vm0 = vcmask 31744   ;;  %vm9_vm1 = vcmask 1048544   ;;  %vm15_vm2 = vcmask 1015744   ;;  %vm21_vm3 = vcmask 982944   ;;  %s401_s0 = inlined_call_operand.vmem [shape: f32[32,4], index: 0, kind: input, shape index: {}]   ;;  %s402_s1 = inlined_call_operand.vmem [shape: f32[1,128], index: 1, kind: output, shape index: {}]  }
   0x1   :  { %v199_v0 = vld [vmem:[%s401_s0 + $0x1f] sm:$0x1]   ;;  %v201_v1 = vld [vmem:[%s401_s0 + $0x1d] sm:$0x1]   ;;  %v200_v2 = vld [vmem:[%s401_s0 + $0x1e] sm:$0x1]  }
   0x2   :  { %7 = vrot.lane.b32.xlu0 %v199_v0, %s261_s10  ;;  %19 = vrot.lane.b32.xlu1 %v201_v1, %s262_s11  ;;  %v202_v3 = vld [vmem:[%s401_s0 + $0x1c] sm:$0x1]   ;;  %s263_s16 = smov 120   ;;  %s264_s17 = smov 112   ;;  %v203_v4 = vld [vmem:[%s401_s0 + $0x1b] sm:$0x1]  }
   0x3   :  { %v204_v5 = vld [vmem:[%s401_s0 + $0x1a] sm:$0x1]   ;;  %s265_s22 = smov 108   ;;  %s266_s23 = smov 104   ;;  %v205_v6 = vld [vmem:[%s401_s0 + $0x19] sm:$0x1]  }
   0x4   :  { %v206_v7 = vld [vmem:[%s401_s0 + $0x18] sm:$0x1]   ;;  %s267_s28 = smov 100   ;;  %s268_s29 = smov 96   ;;  %v207_v8 = vld [vmem:[%s401_s0 + $0x17] sm:$0x1]  }
   0x5   :  { %v208_v9 = vld [vmem:[%s401_s0 + $0x16] sm:$0x1]   ;;  %v2_v10 = vld [vmem:[%s401_s0] sm:$0x1]   ;;  %s269_s7 = smov 92   ;;  %s270_s8 = smov 88  }
   0x6   :  { %13 = vrot.lane.b32.xlu0 %v200_v2, %s263_s16  ;;  %25 = vrot.lane.b32.xlu1 %v202_v3, %s264_s17  ;;  %4 = vst.msk [vmem:[#allocation0] sm:$0x1] %vm3_vm0, %v2_v10   ;;  %v209_v11 = vld [vmem:[%s401_s0 + $0x15] sm:$0x1]   ;;  %v210_v12 = vld [vmem:[%s401_s0 + $0x14] sm:$0x1]  }
   0x7   :  { %s271_s13 = smov 84   ;;  %s272_s14 = smov 80   ;;  %v211_v13 = vld [vmem:[%s401_s0 + $0x13] sm:$0x1]   ;;  %v212_v14 = vld [vmem:[%s401_s0 + $0x12] sm:$0x1]  }
   0x8   :  { %s273_s19 = smov 76   ;;  %s274_s20 = smov 72   ;;  %v213_v15 = vld [vmem:[%s401_s0 + $0x11] sm:$0x1]   ;;  %v214_v16 = vld [vmem:[%s401_s0 + $0x10] sm:$0x1]  }
   0x9   :  { %s275_s25 = smov 68   ;;  %s276_s26 = smov 64   ;;  %v215_v17 = vld [vmem:[%s401_s0 + $0xf] sm:$0x1]   ;;  %v216_v18 = vld [vmem:[%s401_s0 + $0xe] sm:$0x1]  }
   0xa   :  { %31 = vrot.lane.b32.xlu0 %v203_v4, %s265_s22  ;;  %37 = vrot.lane.b32.xlu1 %v204_v5, %s266_s23  ;;  %s277_s2 = smov 60   ;;  %s278_s3 = smov 56   ;;  %v217_v19 = vld [vmem:[%s401_s0 + $0xd] sm:$0x1]   ;;  %v218_v20 = vld [vmem:[%s401_s0 + $0xc] sm:$0x1]  }
   0xb   :  { %s280_s9 = smov 48   ;;  %v219_v21 = vld [vmem:[%s401_s0 + $0xb] sm:$0x1]   ;;  %v220_v22 = vld [vmem:[%s401_s0 + $0xa] sm:$0x1]   ;;  %s282_s15 = smov 40  }
   0xc   :  { %v221_v23 = vld [vmem:[%s401_s0 + $0x9] sm:$0x1]   ;;  %v222_v24 = vld [vmem:[%s401_s0 + $0x8] sm:$0x1]   ;;  %s284_s21 = smov 32   ;;  %s286_s27 = smov 24  }
   0xd   :  { %v223_v25 = vld [vmem:[%s401_s0 + $0x7] sm:$0x1]   ;;  %v224_v26 = vld [vmem:[%s401_s0 + $0x6] sm:$0x1]   ;;  %v225_v27 = vld [vmem:[%s401_s0 + $0x5] sm:$0x1]  }
   0xe   :  { %43 = vrot.lane.b32.xlu0 %v205_v6, %s267_s28  ;;  %49 = vrot.lane.b32.xlu1 %v206_v7, %s268_s29  ;;  %v226_v28 = vld [vmem:[%s401_s0 + $0x4] sm:$0x1]   ;;  %s288_s4 = smov 16   ;;  %v227_v29 = vld [vmem:[%s401_s0 + $0x3] sm:$0x1]   ;;  %s290_s10 = smov 8  }
   0xf   :  { %v228_v30 = vld [vmem:[%s401_s0 + $0x2] sm:$0x1]   ;;  %v229_v31 = vld [vmem:[%s401_s0 + $0x1] sm:$0x1]   ;;  %s291_s0 = smov 4   ;;  %vm27_vm4 = vcmask 950144  }
  0x10   :  { %vm33_vm5 = vcmask 917344   ;;  %vm39_vm6 = vcmask 884544   ;;  %vm45_vm7 = vcmask 851744   ;;  %vm51_vm8 = vcmask 818944  }
  0x11   :  { %vm57_vm9 = vcmask 786144   ;;  %vm63_vm10 = vcmask 753344   ;;  %vm69_vm11 = vcmask 720544   ;;  %vm75_vm12 = vcmask 687744  }
  0x12   :  { %55 = vrot.lane.b32.xlu0 %v207_v8, %s269_s7  ;;  %61 = vrot.lane.b32.xlu1 %v208_v9, %s270_s8  ;;  %s279_s8 = smov 52   ;;  %vm81_vm13 = vcmask 654944   ;;  %vm87_vm14 = vcmask 622144   ;;  %vm93_vm15 = vcmask 589344   ;;  %vm99_vm0 = vcmask 556544  }
  0x16   :  { %67 = vrot.lane.b32.xlu0 %v209_v11, %s271_s13  ;;  %73 = vrot.lane.b32.xlu1 %v210_v12, %s272_s14  ;;  %s281_s14 = smov 44  }
  0x1a   :  { %79 = vrot.lane.b32.xlu0 %v211_v13, %s273_s19  ;;  %85 = vrot.lane.b32.xlu1 %v212_v14, %s274_s20  ;;  %s283_s20 = smov 36  }
  0x1e   :  { %91 = vrot.lane.b32.xlu0 %v213_v15, %s275_s25  ;;  %97 = vrot.lane.b32.xlu1 %v214_v16, %s276_s26  ;;  %s285_s26 = smov 28  }
  0x22   :  { %103 = vrot.lane.b32.xlu0 %v215_v17, %s277_s2  ;;  %109 = vrot.lane.b32.xlu1 %v216_v18, %s278_s3  ;;  %s287_s3 = smov 20  }
  0x26   :  { %115 = vrot.lane.b32.xlu0 %v217_v19, %s279_s8  ;;  %121 = vrot.lane.b32.xlu1 %v218_v20, %s280_s9  ;;  %s289_s9 = smov 12  }
  0x2a   :  { %127 = vrot.lane.b32.xlu0 %v219_v21, %s281_s14  ;;  %133 = vrot.lane.b32.xlu1 %v220_v22, %s282_s15 }
  0x2e   :  { %139 = vrot.lane.b32.xlu0 %v221_v23, %s283_s20  ;;  %145 = vrot.lane.b32.xlu1 %v222_v24, %s284_s21 }
  0x32   :  { %151 = vrot.lane.b32.xlu0 %v223_v25, %s285_s26  ;;  %157 = vrot.lane.b32.xlu1 %v224_v26, %s286_s27 }
  0x36   :  { %163 = vrot.lane.b32.xlu0 %v225_v27, %s287_s3  ;;  %169 = vrot.lane.b32.xlu1 %v226_v28, %s288_s4 }
  0x3a   :  { %175 = vrot.lane.b32.xlu0 %v227_v29, %s289_s9  ;;  %181 = vrot.lane.b32.xlu1 %v228_v30, %s290_s10 }
  0x3e   :  { %187 = vrot.lane.b32.xlu0 %v229_v31, %s291_s0 }
  0x74   :  { %v8_v32 = vpop.permute.xlu0 %7   ;;  %v20_v33 = vpop.permute.xlu1 %19  }
  0x75   :  { %10 = vst.msk [vmem:[#allocation0] sm:$0x1] %vm9_vm1, %v8_v32   ;;  %vm105_vm1 = vcmask 523744  }
  0x78   :  { %v14_v34 = vpop.permute.xlu0 %13   ;;  %v26_v35 = vpop.permute.xlu1 %25  }
  0x79   :  { %16 = vst.msk [vmem:[#allocation0] sm:$0x1] %vm15_vm2, %v14_v34   ;;  %vm111_vm2 = vcmask 490944  }
  0x7a   :  { %22 = vst.msk [vmem:[#allocation0] sm:$0x1] %vm21_vm3, %v20_v33   ;;  %vm117_vm3 = vcmask 458144  }
  0x7b   :  { %28 = vst.msk [vmem:[#allocation0] sm:$0x1] %vm27_vm4, %v26_v35   ;;  %vm123_vm4 = vcmask 425344  }
  0x7c   :  { %v32_v36 = vpop.permute.xlu0 %31   ;;  %v38_v37 = vpop.permute.xlu1 %37  }
  0x7d   :  { %34 = vst.msk [vmem:[#allocation0] sm:$0x1] %vm33_vm5, %v32_v36   ;;  %vm129_vm5 = vcmask 392544  }
  0x7e   :  { %40 = vst.msk [vmem:[#allocation0] sm:$0x1] %vm39_vm6, %v38_v37   ;;  %vm135_vm6 = vcmask 359744  }
  0x80   :  { %v44_v38 = vpop.permute.xlu0 %43   ;;  %v50_v39 = vpop.permute.xlu1 %49  }
  0x81   :  { %46 = vst.msk [vmem:[#allocation0] sm:$0x1] %vm45_vm7, %v44_v38   ;;  %vm141_vm7 = vcmask 326944  }
  0x82   :  { %52 = vst.msk [vmem:[#allocation0] sm:$0x1] %vm51_vm8, %v50_v39   ;;  %vm147_vm8 = vcmask 294144  }
  0x84   :  { %v56_v40 = vpop.permute.xlu0 %55   ;;  %v62_v41 = vpop.permute.xlu1 %61  }
  0x85   :  { %58 = vst.msk [vmem:[#allocation0] sm:$0x1] %vm57_vm9, %v56_v40   ;;  %vm153_vm9 = vcmask 261344  }
  0x86   :  { %64 = vst.msk [vmem:[#allocation0] sm:$0x1] %vm63_vm10, %v62_v41   ;;  %vm159_vm10 = vcmask 228544  }
  0x88   :  { %v68_v42 = vpop.permute.xlu0 %67   ;;  %v74_v43 = vpop.permute.xlu1 %73  }
  0x89   :  { %70 = vst.msk [vmem:[#allocation0] sm:$0x1] %vm69_vm11, %v68_v42   ;;  %vm165_vm11 = vcmask 195744  }
  0x8a   :  { %76 = vst.msk [vmem:[#allocation0] sm:$0x1] %vm75_vm12, %v74_v43   ;;  %vm171_vm12 = vcmask 162944  }
  0x8c   :  { %v80_v44 = vpop.permute.xlu0 %79   ;;  %v86_v45 = vpop.permute.xlu1 %85  }
  0x8d   :  { %82 = vst.msk [vmem:[#allocation0] sm:$0x1] %vm81_vm13, %v80_v44   ;;  %vm177_vm13 = vcmask 130144  }
  0x8e   :  { %88 = vst.msk [vmem:[#allocation0] sm:$0x1] %vm87_vm14, %v86_v45   ;;  %vm183_vm14 = vcmask 97344  }
  0x90   :  { %v92_v46 = vpop.permute.xlu0 %91   ;;  %v98_v47 = vpop.permute.xlu1 %97  }
  0x91   :  { %94 = vst.msk [vmem:[#allocation0] sm:$0x1] %vm93_vm15, %v92_v46   ;;  %vm189_vm15 = vcmask 64544  }
  0x92   :  { %100 = vst.msk [vmem:[#allocation0] sm:$0x1] %vm99_vm0, %v98_v47  }
  0x94   :  { %v104_v48 = vpop.permute.xlu0 %103   ;;  %v110_v49 = vpop.permute.xlu1 %109  }
  0x95   :  { %106 = vst.msk [vmem:[#allocation0] sm:$0x1] %vm105_vm1, %v104_v48  }
  0x96   :  { %112 = vst.msk [vmem:[#allocation0] sm:$0x1] %vm111_vm2, %v110_v49  }
  0x98   :  { %v116_v50 = vpop.permute.xlu0 %115   ;;  %v122_v51 = vpop.permute.xlu1 %121  }
  0x99   :  { %118 = vst.msk [vmem:[#allocation0] sm:$0x1] %vm117_vm3, %v116_v50  }
  0x9a   :  { %124 = vst.msk [vmem:[#allocation0] sm:$0x1] %vm123_vm4, %v122_v51  }
  0x9c   :  { %v128_v52 = vpop.permute.xlu0 %127   ;;  %v134_v53 = vpop.permute.xlu1 %133  }
  0x9d   :  { %130 = vst.msk [vmem:[#allocation0] sm:$0x1] %vm129_vm5, %v128_v52  }
  0x9e   :  { %136 = vst.msk [vmem:[#allocation0] sm:$0x1] %vm135_vm6, %v134_v53  }
  0xa0   :  { %v140_v54 = vpop.permute.xlu0 %139   ;;  %v146_v55 = vpop.permute.xlu1 %145  }
  0xa1   :  { %142 = vst.msk [vmem:[#allocation0] sm:$0x1] %vm141_vm7, %v140_v54  }
  0xa2   :  { %148 = vst.msk [vmem:[#allocation0] sm:$0x1] %vm147_vm8, %v146_v55  }
  0xa4   :  { %v152_v56 = vpop.permute.xlu0 %151   ;;  %v158_v57 = vpop.permute.xlu1 %157  }
  0xa5   :  { %154 = vst.msk [vmem:[#allocation0] sm:$0x1] %vm153_vm9, %v152_v56  }
  0xa6   :  { %160 = vst.msk [vmem:[#allocation0] sm:$0x1] %vm159_vm10, %v158_v57  }
  0xa8   :  { %v164_v58 = vpop.permute.xlu0 %163   ;;  %v170_v59 = vpop.permute.xlu1 %169  }
  0xa9   :  { %166 = vst.msk [vmem:[#allocation0] sm:$0x1] %vm165_vm11, %v164_v58  }
  0xaa   :  { %172 = vst.msk [vmem:[#allocation0] sm:$0x1] %vm171_vm12, %v170_v59  }
  0xac   :  { %v176_v60 = vpop.permute.xlu0 %175   ;;  %v182_v61 = vpop.permute.xlu1 %181  }
  0xad   :  { %178 = vst.msk [vmem:[#allocation0] sm:$0x1] %vm177_vm13, %v176_v60  }
  0xae   :  { %184 = vst.msk [vmem:[#allocation0] sm:$0x1] %vm183_vm14, %v182_v61  }
  0xb0   :  { %v188_v62 = vpop.permute.xlu0 %187  }
  0xb1   :  { %190 = vst.msk [vmem:[#allocation0] sm:$0x1] %vm189_vm15, %v188_v62  }
  0xb8   :  { %v195_v63 = vld [vmem:[#allocation0] sm:$0x1] }
  0xb9   :  { %198 = vst [vmem:[%s402_s1] sm:$0x1] %v195_v63 }

// kernel: tile.43
= control target key start
LH: loop header
LB: loop body
LE: loop exit
PB: predicated region body
PF: predicated region fallthrough
CT: control target
= control target key end

     0   :  { %s22_s0 = inlined_call_operand.vmem [shape: f32[4], index: 0, kind: input, shape index: {}]   ;;  %s23_s1 = inlined_call_operand.vmem [shape: f32[4,4], index: 1, kind: output, shape index: {}]  }
   0x1   :  { %v4_v0 = vld [vmem:[%s22_s0] ss:$0 sm:$0xff] }
   0x2   :  { %5 = vst [vmem:[%s23_s1] sm:$0xf] %v4_v0 }

// kernel: tile.44
= control target key start
LH: loop header
LB: loop body
LE: loop exit
PB: predicated region body
PF: predicated region fallthrough
CT: control target
= control target key end

     0   :  { %vm8_vm0 = vcmask 31744   ;;  %s40_s8 = smov 4   ;;  %s41_s9 = smov 8   ;;  %vm14_vm1 = vcmask 130144   ;;  %vm20_vm2 = vcmask 97344   ;;  %vm26_vm3 = vcmask 64544   ;;  %s58_s0 = inlined_call_operand.vmem [shape: f32[4,4], index: 0, kind: input, shape index: {}]   ;;  %s59_s1 = inlined_call_operand.vmem [shape: f32[1,16], index: 1, kind: output, shape index: {}]  }
   0x1   :  { %v5_v0 = vld [vmem:[%s58_s0] sm:$0xf]  ;;  %s39_s0 = smov 12  }
   0x2   :  { %6 = vst [vmem:[#allocation1] sm:$0xf] %v5_v0 }
   0x9   :  { %v11_v1 = vld [vmem:[#allocation1 + $0x3] sm:$0x1]   ;;  %v23_v2 = vld [vmem:[#allocation1 + $0x1] sm:$0x1]   ;;  %v7_v3 = vld [vmem:[#allocation1] sm:$0x1]  }
   0xa   :  { %12 = vrot.lane.b32.xlu0 %v11_v1, %s39_s0  ;;  %24 = vrot.lane.b32.xlu1 %v23_v2, %s40_s8  ;;  %v17_v4 = vld [vmem:[#allocation1 + $0x2] sm:$0x1]   ;;  %9 = vst.msk [vmem:[#allocation0] sm:$0x1] %vm8_vm0, %v7_v3  }
   0xe   :  { %18 = vrot.lane.b32.xlu0 %v17_v4, %s41_s9 }
  0x7c   :  { %v13_v5 = vpop.permute.xlu0 %12   ;;  %v25_v6 = vpop.permute.xlu1 %24  }
  0x7d   :  { %15 = vst.msk [vmem:[#allocation0] sm:$0x1] %vm14_vm1, %v13_v5  }
  0x80   :  { %v19_v7 = vpop.permute.xlu0 %18  }
  0x81   :  { %21 = vst.msk [vmem:[#allocation0] sm:$0x1] %vm20_vm2, %v19_v7  }
  0x82   :  { %27 = vst.msk [vmem:[#allocation0] sm:$0x1] %vm26_vm3, %v25_v6  }
  0x89   :  { %v32_v8 = vld [vmem:[#allocation0] sm:$0x1] }
  0x8a   :  { %35 = vst [vmem:[%s59_s1] sm:$0x1] %v32_v8 }

// kernel: decoder_block_forward.3
= control target key start
LH: loop header
LB: loop body
LE: loop exit
PB: predicated region body
PF: predicated region fallthrough
CT: control target
= control target key end

     0   :  { %vm372_vm0 = vcmask 1043456   ;;  %vm390_vm1 = vcmask 1040384   ;;  %s652_s1 = inlined_call_operand.vmem [shape: bf16[512,128], index: 1, kind: input, shape index: {}]   ;;  %s653_s0 = inlined_call_operand.vmem [shape: f32[4,512], index: 0, kind: input, shape index: {}]   ;;  %s654_s2 = inlined_call_operand.vmem [shape: f32[1,128], index: 2, kind: input, shape index: {}]   ;;  %s655_s3 = inlined_call_operand.vmem [shape: bf16[4,128], index: 3, kind: output, shape index: {0}]   ;;  %s656_s4 = inlined_call_operand.vmem [shape: f32[1,2,128], index: 4, kind: output, shape index: {1}]  }
   0x1   :  { %v480_v0 = vld [vmem:[%s652_s1 + $0x78] sm:$0xff]   ;;  %v484_v4 = vld [vmem:[%s652_s1 + $0x70] sm:$0xff]   ;;  %v488_v8 = vld [vmem:[%s652_s1 + $0x68] sm:$0xff]  }
   0x2   :  { %v481_v1 = vld [vmem:[%s652_s1 + $0xf8] sm:$0xff]   ;;  %436 = vmatprep.subr.bf16.mxu0 %v480_v0  ;;  %v485_v5 = vld [vmem:[%s652_s1 + $0xf0] sm:$0xff]   ;;  %v489_v9 = vld [vmem:[%s652_s1 + $0xe8] sm:$0xff]  }
   0x3   :  { %v482_v2 = vld [vmem:[%s652_s1 + $0x38] sm:$0xff]   ;;  %458 = vmatprep.subr.bf16.mxu1 %v481_v1  ;;  %v486_v6 = vld [vmem:[%s652_s1 + $0x30] sm:$0xff]   ;;  %v490_v10 = vld [vmem:[%s652_s1 + $0x28] sm:$0xff]  }
   0x4   :  { %v483_v3 = vld [vmem:[%s652_s1 + $0xb8] sm:$0xff]   ;;  %437 = vmatpush3.bf16.msra.mxu0 %v482_v2  ;;  %v487_v7 = vld [vmem:[%s652_s1 + $0xb0] sm:$0xff]   ;;  %v491_v11 = vld [vmem:[%s652_s1 + $0xa8] sm:$0xff]  }
   0x5   :  { %459 = vmatpush3.bf16.msra.mxu1 %v483_v3  ;;  %438 = vmatprep.subr.bf16.mxu0 %v484_v4  ;;  %v492_v12 = vld [vmem:[%s652_s1 + $0x60] sm:$0xff]   ;;  %v496_v16 = vld [vmem:[%s652_s1 + $0x58] sm:$0xff]   ;;  %v500_v20 = vld [vmem:[%s652_s1 + $0x50] sm:$0xff]  }
   0x6   :  { %460 = vmatprep.subr.bf16.mxu1 %v485_v5  ;;  %v493_v13 = vld [vmem:[%s652_s1 + $0xe0] sm:$0xff]   ;;  %v497_v17 = vld [vmem:[%s652_s1 + $0xd8] sm:$0xff]   ;;  %v501_v21 = vld [vmem:[%s652_s1 + $0xd0] sm:$0xff]  }
   0x7   :  { %v494_v14 = vld [vmem:[%s652_s1 + $0x20] sm:$0xff]   ;;  %v498_v18 = vld [vmem:[%s652_s1 + $0x18] sm:$0xff]   ;;  %v502_v22 = vld [vmem:[%s652_s1 + $0x10] sm:$0xff]  }
   0x8   :  { %439 = vmatpush3.bf16.msra.mxu0 %v486_v6  ;;  %v495_v15 = vld [vmem:[%s652_s1 + $0xa0] sm:$0xff]   ;;  %v499_v19 = vld [vmem:[%s652_s1 + $0x98] sm:$0xff]   ;;  %v503_v23 = vld [vmem:[%s652_s1 + $0x90] sm:$0xff]  }
   0x9   :  { %461 = vmatpush3.bf16.msra.mxu1 %v487_v7  ;;  %440 = vmatprep.subr.bf16.mxu0 %v488_v8  ;;  %v504_v24 = vld [vmem:[%s652_s1 + $0x48] sm:$0xff]   ;;  %v508_v28 = vld [vmem:[%s652_s1 + $0x40] sm:$0xff]  }
   0xa   :  { %462 = vmatprep.subr.bf16.mxu1 %v489_v9  ;;  %v505_v25 = vld [vmem:[%s652_s1 + $0xc8] sm:$0xff]   ;;  %v509_v29 = vld [vmem:[%s652_s1 + $0xc0] sm:$0xff]  }
   0xb   :  { %v506_v26 = vld [vmem:[%s652_s1 + $0x8] sm:$0xff]   ;;  %v510_v30 = vld [vmem:[%s652_s1] sm:$0xff]  }
   0xc   :  { %441 = vmatpush3.bf16.msra.mxu0 %v490_v10  ;;  %v507_v27 = vld [vmem:[%s652_s1 + $0x88] sm:$0xff]   ;;  %v511_v31 = vld [vmem:[%s652_s1 + $0x80] sm:$0xff]  }
   0xd   :  { %463 = vmatpush3.bf16.msra.mxu1 %v491_v11  ;;  %442 = vmatprep.subr.bf16.mxu0 %v492_v12  ;;  %v17_v32 = vld [vmem:[%s653_s0] sm:$0xff]  ;;  %v18_v33 = vld [vmem:[%s653_s0 + $0x8] sm:$0xff] }
   0xe   :  { %464 = vmatprep.subr.bf16.mxu1 %v493_v13  ;;  %v21_v34 = vcombine.high %v17_v32, %v17_v32  ;;  %v22_v35 = vcombine.high %v18_v33, %v18_v33  ;;  %v25_v36 = vpack.c.bf16 %v17_v32, %v17_v32  ;;  %v27_v37 = vpack.c.bf16 %v18_v33, %v18_v33  ;;  %v403_v42 = vld [vmem:[%s654_s2] ss:$0 sm:$0xff] }
  0x10   :  { %443 = vmatpush3.bf16.msra.mxu0 %v494_v14  ;;  %v26_v38 = vpack.c.bf16 %v21_v34, %v21_v34  ;;  %v28_v39 = vpack.c.bf16 %v22_v35, %v22_v35 }
  0x11   :  { %465 = vmatpush3.bf16.msra.mxu1 %v495_v15  ;;  %444 = vmatprep.subr.bf16.mxu0 %v496_v16 }
  0x12   :  { %466 = vmatprep.subr.bf16.mxu1 %v497_v17  ;;  %324 = vmatprep.mubr.bf16.mxu0 %v26_v38 }
  0x13   :  { %364 = vmatprep.mubr.bf16.mxu1 %v28_v39 }
  0x14   :  { %445 = vmatpush3.bf16.msra.mxu0 %v498_v18 }
  0x15   :  { %467 = vmatpush3.bf16.msra.mxu1 %v499_v19  ;;  %446 = vmatprep.subr.bf16.mxu0 %v500_v20 }
  0x16   :  { %468 = vmatprep.subr.bf16.mxu1 %v501_v21 }
  0x18   :  { %447 = vmatpush3.bf16.msra.mxu0 %v502_v22 }
  0x19   :  { %469 = vmatpush3.bf16.msra.mxu1 %v503_v23  ;;  %448 = vmatprep.subr.bf16.mxu0 %v504_v24 }
  0x1a   :  { %470 = vmatprep.subr.bf16.mxu1 %v505_v25 }
  0x1c   :  { %449 = vmatpush3.bf16.msra.mxu0 %v506_v26 }
  0x1d   :  { %471 = vmatpush3.bf16.msra.mxu1 %v507_v27  ;;  %450 = vmatprep.subr.bf16.mxu0 %v508_v28 }
  0x1e   :  { %472 = vmatprep.subr.bf16.mxu1 %v509_v29 }
  0x20   :  { %451 = vmatpush3.bf16.msra.mxu0 %v510_v30 }
  0x21   :  { %473 = vmatpush3.bf16.msra.mxu1 %v511_v31 }
  0x23   :  { %325 = vmatmul.mubr.bf16.vlgmr.msra.gmra.mxu0 %v25_v36 }
  0x24   :  { %365 = vmatmul.mubr.bf16.vlgmr.msra.gmra.mxu1 %v27_v37 }
  0xe3   :  { %v452_v40 = vpop.f32.mrf.mxu0 }
  0xe4   :  { %v474_v41 = vpop.f32.mrf.mxu1 }
  0xe5   :  { %v453_v43 = vpop.f32.mrf.mxu0 }
  0xe6   :  { %v475_v44 = vpop.f32.mrf.mxu1  ;;  %v454_v45 = vadd.f32 %v453_v43, %v452_v40 }
  0xe7   :  { %v455_v46 = vpop.f32.mrf.mxu0  ;;  %v476_v49 = vadd.f32 %v475_v44, %v474_v41 }
  0xe8   :  { %v477_v47 = vpop.f32.mrf.mxu1  ;;  %v327_v48 = vadd.f32 %v454_v45, %v403_v42 }
  0xe9   :  { %v456_v50 = vpop.f32.mrf.mxu0 }
  0xea   :  { %v478_v51 = vpop.f32.mrf.mxu1  ;;  %v367_v52 = vadd.f32 %v476_v49, %v327_v48 }
  0xec   :  { %v373_v53 = vsel %vm372_vm0, %v367_v52, 0.0  ;;  %v393_v54 = vpack.c.bf16 %v367_v52, %v367_v52 }
  0xed   :  { %v374_v55 = vrot.slane %v373_v53, 4 }
  0xee   :  { %394 = vst [vmem:[%s655_s3] sm:$0x3] %v393_v54 }
  0xef   :  { %v375_v56 = vadd.f32 %v374_v55, %v373_v53 }
  0xf1   :  { %v376_v57 = vrot.slane %v375_v56, 2 }
  0xf3   :  { %v377_v58 = vadd.f32 %v376_v57, %v375_v56 }
  0xf5   :  { %v378_v59 = vrot.slane %v377_v58, 1 }
  0xf7   :  { %v379_v60 = vadd.f32 %v378_v59, %v377_v58 }
  0xf9   :  { %v380_v61 = vmul.f32 0.25, %v379_v60 }
  0xfb   :  { %v381_v62 = vsub.f32 %v367_v52, %v380_v61 }
  0xfd   :  { %v382_v63 = vmul.f32 %v381_v62, %v381_v62 }
  0xff   :  { %v383_v0 = vsel %vm372_vm0, %v382_v63, 0.0 }
 0x100   :  { %v384_v1 = vrot.slane %v383_v0, 4 }
 0x102   :  { %v385_v2 = vadd.f32 %v384_v1, %v383_v0 }
 0x104   :  { %v386_v3 = vrot.slane %v385_v2, 2 }
 0x106   :  { %v387_v4 = vadd.f32 %v386_v3, %v385_v2 }
 0x108   :  { %v388_v5 = vrot.slane %v387_v4, 1 }
 0x10a   :  { %v389_v6 = vadd.f32 %v388_v5, %v387_v4 }
 0x10c   :  { %v391_v7 = vsel %vm390_vm1, %v379_v60, %v389_v6 }
 0x10d   :  { %392 = vst [vmem:[%s656_s4] sm:$0x3] %v391_v7 }

// kernel: decoder_block_forward.4
= control target key start
LH: loop header
LB: loop body
LE: loop exit
PB: predicated region body
PF: predicated region fallthrough
CT: control target
= control target key end

     0   :  { %s1352_s24 = smov 0   ;;  %s1354_s25 = smov 0   ;;  %s1522_s0 = inlined_call_operand.vmem [shape: bf16[2,8,8,4], index: 0, kind: input, shape index: {}, may-alias: {0,1}]   ;;  %s1523_s1 = inlined_call_operand.vmem [shape: bf16[2,8,8,4], index: 1, kind: input, shape index: {}, may-alias: {0,1}]   ;;  %s1524_s2 = inlined_call_operand.vmem [shape: f32[1,4], index: 2, kind: input, shape index: {}]   ;;  %s1525_s3 = inlined_call_operand.vmem [shape: f32[1,4], index: 3, kind: input, shape index: {}]   ;;  %s1526_s4 = inlined_call_operand.vmem [shape: bf16[4,4,16], index: 4, kind: input, shape index: {}]   ;;  %s1527_s5 = inlined_call_operand.vmem [shape: f32[1,16], index: 5, kind: input, shape index: {}]   ;;  %s1528_s6 = inlined_call_operand.vmem [shape: bf16[2,8,8,16], index: 6, kind: output, shape index: {0}]   ;;  %s1529_s7 = inlined_call_operand.vmem [shape: f32[2,1,2,16], index: 7, kind: output, shape index: {1}]  }
   0x1   :  { %s1356_s26 = smov 0  }
   0x2 LB: > { %s30_s27 = sadd.s32 1, %s1306_s25  ;;  %p1128_p0 = scmp.ge.s32.totalorder %s1310_s26, 1  ;;  %s1310_s26 = sphi %s1356_s26, %s18_s26   ;;  %s1306_s25 = sphi %s1354_s25, %s1531_s25   ;;  %s1302_s24 = sphi %s1352_s24, %s1530_s24  }
   0x3   : > { %p32_p1 = scmp.ge.s32.totalorder %s30_s27, 2  ;;  %p294_p2 = scmp.lt.s32.totalorder %s1310_s26, 3 }
   0x5   : > { %s1533_s27 = smov (%p32_p1, %s30_s27), 0  ;;  %p295_p3 = pnand %p1128_p0, %p294_p2 }
   0x6   : > { %p354_p4 = scmp.lt.s32.totalorder (!%p295_p3), %s1302_s24, 1 }
   0x7   : > { %298 = sbr.rel (%p295_p3) target bundleno = 310 (0x136), region = 44 }
   0xc   : > { %v464_v0 = vld [vmem:[%s1526_s4] sm:$0x3]  ;;  %vm485_vm0 = vcmask 1041408   ;;  %v1143_v1 = vld [vmem:[%s1526_s4 + $0x2] sm:$0x3]  ;;  %s1535_s24 = smov (!%p354_p4, %s1302_s24), 1 }
   0xd   : > { %1260 = vmatprep.subr.msk.bf16.mxu0 %vm485_vm0, %v464_v0  ;;  %v487_v2 = vsel %vm485_vm0, %v464_v0, 0  ;;  %1261 = vmatprep.subr.msk.bf16.mxu1 %vm485_vm0, %v1143_v1  ;;  %v606_v3 = vsel %vm485_vm0, %v1143_v1, 0  ;;  %v1148_v4 = vld [vmem:[%s1526_s4 + $0x4] sm:$0x3]  ;;  %v1153_v5 = vld [vmem:[%s1526_s4 + $0x6] sm:$0x3] }
   0xe   : > { %1221 = vmatpush3.bf16.msra.mxu0 %v487_v2  ;;  %1231 = vmatpush3.bf16.msra.mxu1 %v606_v3  ;;  %s1390_s13 = sshll.u32 %s1535_s24, 5  ;;  %v1400_v6 = vld [vmem:[%s1524_s2] ss:$0 sm:$0xff]  ;;  %vm472_vm1 = vcmask 31744   ;;  %v700_v10 = vsel %vm485_vm0, %v1148_v4, 0  ;;  %vm578_vm2 = vcmask 1046528  }
   0xf   : > { %1262 = vmatprep.subr.msk.bf16.mxu0 %vm485_vm0, %v1148_v4  ;;  %1263 = vmatprep.subr.msk.bf16.mxu1 %vm485_vm0, %v1153_v5  ;;  %s361_s16 = scalar_lea.vmem %s1522_s0, %s1390_s13  ;;  %v1406_v16 = vld [vmem:[%s1525_s3] ss:$0 sm:$0xff]  ;;  %s1170_s21 = sadd.s32 28, %s1390_s13  ;;  %v798_v58 = vsel %vm485_vm0, %v1153_v5, 0  ;;  %vm969_vm3 = vcmask 125952   ;;  %vm873_vm4 = vcmask 130048  }
  0x10   : > { %v1181_v7 = vld [vmem:[%s361_s16] sm:$0xff]   ;;  %v1197_v8 = vld [vmem:[%s361_s16 + $0x8] sm:$0xff]   ;;  %v1198_v9 = vld [vmem:[%s361_s16 + $0x10] sm:$0xff]   ;;  %s374_s28 = scalar_lea.vmem %s1523_s1, %s1170_s21  ;;  %s1465_s10 = scalar_lea.vmem %s1528_s6, %s1390_s13  ;;  %vm933_vm5 = vcmask 1040384   ;;  %vm935_vm6 = vcmask 123904  }
  0x11   : > { %v1182_v11 = vunpack.c.l.bf16 %v1181_v7  ;;  %v1183_v12 = vunpack.c.h.bf16 %v1181_v7  ;;  %v1190_v13 = vunpack.c.l.bf16 %v1198_v9  ;;  %v1199_v14 = vld [vmem:[%s361_s16 + $0x18] sm:$0xff]   ;;  %v1186_v15 = vunpack.c.l.bf16 %v1197_v8  ;;  %v451_v59 = vld [vmem:[%s374_s28] sm:$0xf]  ;;  %s1135_s11 = sshll.u32 %s1535_s24, 1 }
  0x12   : > { %v1187_v17 = vunpack.c.h.bf16 %v1197_v8  ;;  %v1191_v18 = vunpack.c.h.bf16 %v1198_v9  ;;  %v1194_v19 = vunpack.c.l.bf16 %v1199_v14  ;;  %v1195_v20 = vunpack.c.h.bf16 %v1199_v14  ;;  %s395_s14 = scalar_lea.vmem %s1529_s7, %s1135_s11 }
  0x13   : > { %v421_v21 = vmul.f32 %v1182_v11, %v1400_v6  ;;  %v422_v22 = vmul.f32 %v1183_v12, %v1400_v6  ;;  %v423_v23 = vmul.f32 %v1186_v15, %v1400_v6  ;;  %v425_v24 = vmul.f32 %v1190_v13, %v1400_v6 }
  0x14   : > { %v424_v25 = vmul.f32 %v1187_v17, %v1400_v6  ;;  %v426_v26 = vmul.f32 %v1191_v18, %v1400_v6  ;;  %v427_v27 = vmul.f32 %v1194_v19, %v1400_v6  ;;  %v428_v28 = vmul.f32 %v1195_v20, %v1400_v6 }
  0x15   : > { %v435_v29 = vadd.f32 %v1406_v16, %v421_v21  ;;  %v436_v30 = vadd.f32 %v1406_v16, %v422_v22  ;;  %v437_v31 = vadd.f32 %v1406_v16, %v423_v23  ;;  %v439_v32 = vadd.f32 %v1406_v16, %v425_v24 }
  0x16   : > { %v438_v33 = vadd.f32 %v1406_v16, %v424_v25  ;;  %v440_v34 = vadd.f32 %v1406_v16, %v426_v26  ;;  %v441_v35 = vadd.f32 %v1406_v16, %v427_v27  ;;  %v442_v36 = vadd.f32 %v1406_v16, %v428_v28 }
  0x17   : > { %v443_v37 = vmax.f32 %v435_v29, 0.0  ;;  %v444_v38 = vmax.f32 %v436_v30, 0.0  ;;  %v445_v39 = vmax.f32 %v437_v31, 0.0  ;;  %v447_v40 = vmax.f32 %v439_v32, 0.0  ;;  %v1138_v29 = vld [vmem:[%s1527_s5] ss:$0 sm:$0xff] }
  0x18   : > { %v446_v41 = vmax.f32 %v438_v33, 0.0  ;;  %v448_v42 = vmax.f32 %v440_v34, 0.0  ;;  %v449_v43 = vmax.f32 %v441_v35, 0.0  ;;  %v450_v44 = vmax.f32 %v442_v36, 0.0 }
  0x19   : > { %v460_v45 = vpack.c.bf16 %v444_v38, %v443_v37  ;;  %v562_v46 = vrot.slane %v443_v37, 1  ;;  %v563_v47 = vrot.slane %v444_v38, 1  ;;  %v564_v48 = vrot.slane %v445_v39, 1 }
  0x1a   : > { %v461_v49 = vpack.c.bf16 %v446_v41, %v445_v39  ;;  %v565_v50 = vrot.slane %v446_v41, 1  ;;  %v566_v51 = vrot.slane %v447_v40, 1  ;;  %v462_v52 = vpack.c.bf16 %v448_v42, %v447_v40 }
  0x1b   : > { %1222 = vmatprep.mubr.msk.bf16.mxu0 %vm472_vm1, %v460_v45  ;;  %v579_v53 = vsel %vm578_vm2, %v562_v46, 0.0  ;;  %v580_v54 = vsel %vm578_vm2, %v563_v47, 0.0  ;;  %v581_v55 = vsel %vm578_vm2, %v564_v48, 0.0  ;;  %v567_v62 = vrot.slane %v448_v42, 1 }
  0x1c   : > { %1223 = vmatmul.mubr.msk.bf16.vlgmr.msra.gmra.mxu0 %vm472_vm1, %v461_v49  ;;  %v582_v56 = vsel %vm578_vm2, %v565_v50, 0.0  ;;  %v587_v57 = vpack.c.bf16 %v580_v54, %v579_v53  ;;  %v583_v60 = vsel %vm578_vm2, %v566_v51, 0.0  ;;  %v568_v63 = vrot.slane %v449_v43, 1 }
  0x1d   : > { %1241 = vmatpush3.bf16.msra.mxu0 %v700_v10  ;;  %v588_v61 = vpack.c.bf16 %v582_v56, %v581_v55  ;;  %1226 = vmatprep.mubr.msk.bf16.mxu0 %vm472_vm1, %v462_v52  ;;  %v569_v0 = vrot.slane %v450_v44, 1  ;;  %v584_v1 = vsel %vm578_vm2, %v567_v62, 0.0  ;;  %v452_v2 = vunpack.c.l.bf16 %v451_v59 }
  0x1e   : > { %1232 = vmatprep.mubr.msk.bf16.mxu1 %vm472_vm1, %v587_v57  ;;  %v463_v3 = vpack.c.bf16 %v450_v44, %v449_v43  ;;  %v589_v4 = vpack.c.bf16 %v584_v1, %v583_v60  ;;  %v585_v5 = vsel %vm578_vm2, %v568_v63, 0.0  ;;  %v681_v8 = vpack.c.bf16 %v445_v39, %v444_v38 }
  0x1f   : > { %1233 = vmatmul.mubr.msk.bf16.vlgmr.msra.gmra.mxu1 %vm472_vm1, %v588_v61  ;;  %v586_v7 = vsel %vm578_vm2, %v569_v0, 0.0  ;;  %v453_v9 = vmul.f32 %v1400_v6, %v452_v2  ;;  %v779_v12 = vpack.c.bf16 %v581_v55, %v580_v54  ;;  %v682_v14 = vpack.c.bf16 %v447_v40, %v446_v41 }
  0x20   : > { %1251 = vmatpush3.bf16.msra.mxu1 %v798_v58  ;;  %1236 = vmatprep.mubr.msk.bf16.mxu1 %vm472_vm1, %v589_v4  ;;  %v590_v10 = vpack.c.bf16 %v586_v7, %v585_v5  ;;  %v683_v17 = vpack.c.bf16 %v449_v43, %v448_v42  ;;  %v780_v18 = vpack.c.bf16 %v583_v60, %v582_v56 }
  0x21   : > { %v454_v11 = vadd.f32 %v1406_v16, %v453_v9  ;;  %v781_v6 = vpack.c.bf16 %v585_v5, %v584_v1 }
  0x23   : > { %v455_v13 = vmax.f32 %v454_v11, 0.0 }
  0x24   : > { %1227 = vmatmul.mubr.msk.bf16.gmra.mxu0 %vm472_vm1, %v463_v3 }
  0x25   : > { %1242 = vmatprep.mubr.msk.bf16.mxu0 %vm472_vm1, %v681_v8  ;;  %v459_v15 = vmul.f32 0.0, %v455_v13 }
  0x27   : > { %1237 = vmatmul.mubr.msk.bf16.gmra.mxu1 %vm472_vm1, %v590_v10  ;;  %v776_v19 = vrot.slane %v459_v15, 1  ;;  %v684_v16 = vpack.c.bf16 %v459_v15, %v450_v44 }
  0x28   : > { %1252 = vmatprep.mubr.msk.bf16.mxu1 %vm472_vm1, %v779_v12 }
  0x29   : > { %v778_v20 = vsel %vm578_vm2, %v776_v19, 0.0 }
  0x2a   : > { %v782_v21 = vpack.c.bf16 %v778_v20, %v586_v7 }
  0x2c   : > { %1243 = vmatmul.mubr.msk.bf16.vlgmr.msra.gmra.mxu0 %vm472_vm1, %v682_v14 }
  0x2d   : > { %1246 = vmatprep.mubr.msk.bf16.mxu0 %vm472_vm1, %v683_v17 }
  0x2f   : > { %1253 = vmatmul.mubr.msk.bf16.vlgmr.msra.gmra.mxu1 %vm472_vm1, %v780_v18 }
  0x30   : > { %1256 = vmatprep.mubr.msk.bf16.mxu1 %vm472_vm1, %v781_v6 }
  0x34   : > { %1247 = vmatmul.mubr.msk.bf16.gmra.mxu0 %vm472_vm1, %v684_v16 }
  0x37   : > { %1257 = vmatmul.mubr.msk.bf16.gmra.mxu1 %vm472_vm1, %v782_v21 }
  0xdc   : > { %v1224_v22 = vpop.f32.mrf.mxu0 }
  0xdd   : > { %v532_v33 = vadd.f32 %v1224_v22, %v1138_v29 }
  0xde   : > { %v523_v23 = vpop.f32.mrf.mxu0 }
  0xdf   : > { %v1234_v24 = vpop.f32.mrf.mxu1  ;;  %v524_v36 = vadd.f32 %v1138_v29, %v523_v23 }
  0xe0   : > { %v1225_v25 = vpop.f32.mrf.mxu0  ;;  %v675_v39 = vadd.f32 %v1234_v24, %v532_v33 }
  0xe1   : > { %v642_v26 = vpop.f32.mrf.mxu1  ;;  %v535_v40 = vadd.f32 %v1225_v25, %v1138_v29 }
  0xe2   : > { %v526_v27 = vpop.f32.mrf.mxu0  ;;  %v673_v43 = vadd.f32 %v642_v26, %v524_v36 }
  0xe3   : > { %v1235_v28 = vpop.f32.mrf.mxu1  ;;  %v527_v44 = vadd.f32 %v1138_v29, %v526_v27 }
  0xe4   : > { %v1228_v30 = vpop.f32.mrf.mxu0  ;;  %v676_v48 = vadd.f32 %v1235_v28, %v535_v40 }
  0xe5   : > { %v645_v31 = vpop.f32.mrf.mxu1  ;;  %v548_v49 = vadd.f32 %v1228_v30, %v1138_v29 }
  0xe6   : > { %v539_v32 = vpop.f32.mrf.mxu0  ;;  %v674_v54 = vadd.f32 %v645_v31, %v527_v44 }
  0xe7   : > { %v1238_v34 = vpop.f32.mrf.mxu1  ;;  %v540_v55 = vadd.f32 %v1138_v29, %v539_v32 }
  0xe8   : > { %v1229_v35 = vpop.f32.mrf.mxu0  ;;  %v679_v61 = vadd.f32 %v1238_v34, %v548_v49 }
  0xe9   : > { %v658_v37 = vpop.f32.mrf.mxu1  ;;  %v551_v62 = vadd.f32 %v1229_v35, %v1138_v29 }
  0xea   : > { %v542_v38 = vpop.f32.mrf.mxu0  ;;  %v677_v4 = vadd.f32 %v658_v37, %v540_v55 }
  0xeb   : > { %v1239_v41 = vpop.f32.mrf.mxu1  ;;  %v543_v5 = vadd.f32 %v1138_v29, %v542_v38 }
  0xec   : > { %v1244_v42 = vpop.f32.mrf.mxu0  ;;  %v680_v12 = vadd.f32 %v1239_v41, %v551_v62 }
  0xed   : > { %v769_v45 = vadd.f32 %v1244_v42, %v675_v39  ;;  %v661_v46 = vpop.f32.mrf.mxu1 }
  0xee   : > { %v736_v47 = vpop.f32.mrf.mxu0  ;;  %v678_v16 = vadd.f32 %v661_v46, %v543_v5 }
  0xef   : > { %v767_v50 = vadd.f32 %v736_v47, %v673_v43  ;;  %v1254_v51 = vpop.f32.mrf.mxu1 }
  0xf0   : > { %v1459_v52 = vadd.f32 %v1254_v51, %v769_v45  ;;  %v1245_v53 = vpop.f32.mrf.mxu0 }
  0xf1   : > { %v770_v56 = vadd.f32 %v1245_v53, %v676_v48  ;;  %v834_v57 = vpop.f32.mrf.mxu1 }
  0xf2   : > { %v1174_v58 = vpack.c.bf16 %v1459_v52, %v1459_v52  ;;  %v1469_v59 = vadd.f32 %v834_v57, %v767_v50  ;;  %v739_v60 = vpop.f32.mrf.mxu0  ;;  %v877_v23 = vsel %vm873_vm4, %v1459_v52, 0.0 }
  0xf3   : > { %v768_v63 = vadd.f32 %v739_v60, %v674_v54  ;;  %v1255_v0 = vpop.f32.mrf.mxu1 }
  0xf4   : > { %972 = vst.msk [vmem:[%s1465_s10 + $0x8] sm:$0xf] %vm969_vm3, %v1174_v58  ;;  %v1172_v1 = vpack.c.bf16 %v1469_v59, %v1469_v59  ;;  %v868_v2 = vadd.f32 %v1255_v0, %v770_v56  ;;  %v1248_v3 = vpop.f32.mrf.mxu0  ;;  %v874_v15 = vsel %vm873_vm4, %v1469_v59, 0.0 }
  0xf5   : > { %v773_v7 = vadd.f32 %v1248_v3, %v679_v61  ;;  %v837_v8 = vpop.f32.mrf.mxu1 }
  0xf6   : > { %970 = vst.msk [vmem:[%s1465_s10] sm:$0xf] %vm969_vm3, %v1172_v1  ;;  %v1175_v9 = vpack.c.bf16 %v868_v2, %v868_v2  ;;  %v866_v10 = vadd.f32 %v837_v8, %v768_v63  ;;  %v752_v11 = vpop.f32.mrf.mxu0  ;;  %v879_v30 = vsel %vm873_vm4, %v868_v2, 0.0 }
  0xf7   : > { %v771_v13 = vadd.f32 %v752_v11, %v677_v4  ;;  %v1258_v14 = vpop.f32.mrf.mxu1 }
  0xf8   : > { %973 = vst.msk [vmem:[%s1465_s10 + $0xc] sm:$0xf] %vm969_vm3, %v1175_v9  ;;  %v875_v17 = vsel %vm873_vm4, %v866_v10, 0.0  ;;  %v1173_v18 = vpack.c.bf16 %v866_v10, %v866_v10  ;;  %v871_v6 = vadd.f32 %v1258_v14, %v773_v7  ;;  %v1249_v19 = vpop.f32.mrf.mxu0 }
  0xf9   : > { %v876_v20 = vadd.f32 %v875_v17, %v874_v15  ;;  %v774_v21 = vadd.f32 %v1249_v19, %v680_v12  ;;  %v850_v22 = vpop.f32.mrf.mxu1 }
  0xfa   : > { %971 = vst.msk [vmem:[%s1465_s10 + $0x4] sm:$0xf] %vm969_vm3, %v1173_v18  ;;  %v1178_v24 = vpack.c.bf16 %v871_v6, %v871_v6  ;;  %v869_v25 = vadd.f32 %v850_v22, %v771_v13  ;;  %v755_v26 = vpop.f32.mrf.mxu0  ;;  %v885_v42 = vsel %vm873_vm4, %v871_v6, 0.0 }
  0xfb   : > { %v878_v27 = vadd.f32 %v877_v23, %v876_v20  ;;  %v772_v28 = vadd.f32 %v755_v26, %v678_v16  ;;  %v1259_v29 = vpop.f32.mrf.mxu1 }
  0xfc   : > { %976 = vst.msk [vmem:[%s1465_s10 + $0x18] sm:$0xf] %vm969_vm3, %v1178_v24  ;;  %v1176_v31 = vpack.c.bf16 %v869_v25, %v869_v25  ;;  %v872_v32 = vadd.f32 %v1259_v29, %v774_v21  ;;  %v881_v35 = vsel %vm873_vm4, %v869_v25, 0.0 }
  0xfd   : > { %v880_v33 = vadd.f32 %v879_v30, %v878_v27  ;;  %v853_v34 = vpop.f32.mrf.mxu1 }
  0xfe   : > { %974 = vst.msk [vmem:[%s1465_s10 + $0x10] sm:$0xf] %vm969_vm3, %v1176_v31  ;;  %v1179_v36 = vpack.c.bf16 %v872_v32, %v872_v32  ;;  %v870_v37 = vadd.f32 %v853_v34, %v772_v28  ;;  %v887_v44 = vsel %vm873_vm4, %v872_v32, 0.0 }
  0xff   : > { %v882_v38 = vadd.f32 %v881_v35, %v880_v33 }
 0x100   : > { %977 = vst.msk [vmem:[%s1465_s10 + $0x1c] sm:$0xf] %vm969_vm3, %v1179_v36  ;;  %v883_v39 = vsel %vm873_vm4, %v870_v37, 0.0  ;;  %v1177_v40 = vpack.c.bf16 %v870_v37, %v870_v37 }
 0x101   : > { %v884_v41 = vadd.f32 %v883_v39, %v882_v38 }
 0x102   : > { %975 = vst.msk [vmem:[%s1465_s10 + $0x14] sm:$0xf] %vm969_vm3, %v1177_v40 }
 0x103   : > { %v886_v43 = vadd.f32 %v885_v42, %v884_v41 }
 0x105   : > { %v888_v45 = vadd.f32 %v887_v44, %v886_v43 }
 0x107   : > { %v889_v46 = vrot.slane %v888_v45, 4 }
 0x109   : > { %v890_v47 = vadd.f32 %v889_v46, %v888_v45 }
 0x10b   : > { %v891_v48 = vrot.slane %v890_v47, 2 }
 0x10d   : > { %v892_v49 = vadd.f32 %v891_v48, %v890_v47 }
 0x10f   : > { %v893_v50 = vrot.slane %v892_v49, 1 }
 0x111   : > { %v894_v51 = vadd.f32 %v893_v50, %v892_v49 }
 0x113   : > { %v895_v53 = vmul.f32 0.015625, %v894_v51 }
 0x115   : > { %v896_v54 = vsub.f32 %v1469_v59, %v895_v53  ;;  %v897_v55 = vsub.f32 %v866_v10, %v895_v53  ;;  %v898_v56 = vsub.f32 %v1459_v52, %v895_v53  ;;  %v899_v57 = vsub.f32 %v868_v2, %v895_v53 }
 0x116   : > { %v900_v58 = vsub.f32 %v869_v25, %v895_v53  ;;  %v901_v63 = vsub.f32 %v870_v37, %v895_v53  ;;  %v902_v5 = vsub.f32 %v871_v6, %v895_v53  ;;  %v903_v9 = vsub.f32 %v872_v32, %v895_v53 }
 0x117   : > { %v904_v60 = vmul.f32 %v896_v54, %v896_v54  ;;  %v905_v61 = vmul.f32 %v897_v55, %v897_v55  ;;  %v906_v62 = vmul.f32 %v898_v56, %v898_v56  ;;  %v907_v0 = vmul.f32 %v899_v57, %v899_v57 }
 0x118   : > { %v908_v7 = vmul.f32 %v900_v58, %v900_v58  ;;  %v909_v10 = vmul.f32 %v901_v63, %v901_v63  ;;  %v910_v11 = vmul.f32 %v902_v5, %v902_v5  ;;  %v911_v14 = vmul.f32 %v903_v9, %v903_v9 }
 0x119   : > { %v912_v1 = vsel %vm873_vm4, %v904_v60, 0.0  ;;  %v913_v3 = vsel %vm873_vm4, %v905_v61, 0.0  ;;  %v915_v8 = vsel %vm873_vm4, %v906_v62, 0.0  ;;  %v917_v52 = vsel %vm873_vm4, %v907_v0, 0.0 }
 0x11a   : > { %v914_v4 = vadd.f32 %v913_v3, %v912_v1  ;;  %v919_v12 = vsel %vm873_vm4, %v908_v7, 0.0  ;;  %v921_v15 = vsel %vm873_vm4, %v909_v10, 0.0  ;;  %v923_v18 = vsel %vm873_vm4, %v910_v11, 0.0 }
 0x11b   : > { %v925_v19 = vsel %vm873_vm4, %v911_v14, 0.0 }
 0x11c   : > { %v916_v59 = vadd.f32 %v915_v8, %v914_v4 }
 0x11e   : > { %v918_v2 = vadd.f32 %v917_v52, %v916_v59 }
 0x120   : > { %v920_v13 = vadd.f32 %v919_v12, %v918_v2 }
 0x122   : > { %v922_v17 = vadd.f32 %v921_v15, %v920_v13 }
 0x124   : > { %v924_v6 = vadd.f32 %v923_v18, %v922_v17 }
 0x126   : > { %v926_v16 = vadd.f32 %v925_v19, %v924_v6 }
 0x128   : > { %v927_v20 = vrot.slane %v926_v16, 4 }
 0x12a   : > { %v928_v21 = vadd.f32 %v927_v20, %v926_v16 }
 0x12c   : > { %v929_v22 = vrot.slane %v928_v21, 2 }
 0x12e   : > { %v930_v23 = vadd.f32 %v929_v22, %v928_v21 }
 0x130   : > { %v931_v24 = vrot.slane %v930_v23, 1 }
 0x132   : > { %v932_v25 = vadd.f32 %v931_v24, %v930_v23 }
 0x134   : > { %v934_v26 = vsel %vm933_vm5, %v894_v51, %v932_v25 }
 0x135   : > { %936 = vst.msk [vmem:[%s395_s14] sm:$0x3] %vm935_vm6, %v934_v26 }
 0x136 PF: > { %s18_s26 = sadd.s32 1, %s1310_s26   ;;  %s1530_s24 = smov %s1306_s25 }
 0x137   : > { %p15_p5 = scmp.ge.s32.totalorder %s18_s26, 4   ;;  %s1531_s25 = smov %s1533_s27 }
 0x139   :  { %17 = sbr.rel (!%p15_p5) target bundleno = 2 (0x2), region = 92 }

// kernel: tile.56
= control target key start
LH: loop header
LB: loop body
LE: loop exit
PB: predicated region body
PF: predicated region fallthrough
CT: control target
= control target key end

     0   :  { %s40_s0 = inlined_call_operand.vmem [shape: f32[8], index: 0, kind: input, shape index: {}]   ;;  %s41_s1 = inlined_call_operand.vmem [shape: f32[32,8], index: 1, kind: output, shape index: {}]  }
   0x1   :  { %v4_v0 = vld [vmem:[%s40_s0] ss:$0 sm:$0xff] }
   0x2   :  { %5 = vst [vmem:[%s41_s1] sm:$0xff] %v4_v0  ;;  %12 = vst [vmem:[%s41_s1 + $0x8] sm:$0xff] %v4_v0 }
   0x3   :  { %13 = vst [vmem:[%s41_s1 + $0x10] sm:$0xff] %v4_v0  ;;  %14 = vst [vmem:[%s41_s1 + $0x18] sm:$0xff] %v4_v0 }

// kernel: tile.59
= control target key start
LH: loop header
LB: loop body
LE: loop exit
PB: predicated region body
PF: predicated region fallthrough
CT: control target
= control target key end

     0   :  { %s7_s6 = smov 3  ;;  %s21_s9 = smov 3  ;;  %vm4_vm0 = vcmask 64512   ;;  %vm11_vm1 = vcmask 1048512   ;;  %vm18_vm2 = vcmask 982912   ;;  %vm25_vm3 = vcmask 917312   ;;  %s235_s0 = inlined_call_operand.vmem [shape: f32[32,8], index: 0, kind: input, shape index: {}]   ;;  %s236_s1 = inlined_call_operand.vmem [shape: f32[1,256], index: 1, kind: output, shape index: {}]  }
   0x1   :  { %v125_v0 = vld [vmem:[%s235_s0 + $0xf] ss:$16 sm:%s7_s6]   ;;  %s156_s10 = smov 120   ;;  %v127_v1 = vld [vmem:[%s235_s0 + $0xd] ss:$16 sm:%s21_s9]   ;;  %s14_s13 = smov 3 }
   0x2   :  { %9 = vrot.lane.b32.xlu0 %v125_v0, %s156_s10  ;;  %s157_s14 = smov 104   ;;  %v126_v2 = vld [vmem:[%s235_s0 + $0xe] ss:$16 sm:%s14_s13]   ;;  %s28_s17 = smov 3  ;;  %vm32_vm4 = vcmask 851712   ;;  %vm39_vm5 = vcmask 786112  }
   0x3   :  { %23 = vrot.lane.b32.xlu1 %v127_v1, %s157_s14  ;;  %v128_v3 = vld [vmem:[%s235_s0 + $0xc] ss:$16 sm:%s28_s17]   ;;  %s35_s20 = smov 3  ;;  %s42_s21 = smov 3  ;;  %vm46_vm6 = vcmask 720512   ;;  %vm53_vm7 = vcmask 654912  }
   0x4   :  { %s158_s22 = smov 112   ;;  %s159_s23 = smov 96   ;;  %v129_v4 = vld [vmem:[%s235_s0 + $0xb] ss:$16 sm:%s35_s20]   ;;  %v130_v5 = vld [vmem:[%s235_s0 + $0xa] ss:$16 sm:%s42_s21]  }
   0x5   :  { %s49_s28 = smov 3  ;;  %s56_s29 = smov 3  ;;  %vm60_vm8 = vcmask 589312   ;;  %vm67_vm9 = vcmask 523712   ;;  %vm74_vm10 = vcmask 458112   ;;  %vm81_vm11 = vcmask 392512  }
   0x6   :  { %16 = vrot.lane.b32.xlu0 %v126_v2, %s158_s22  ;;  %s160_s30 = smov 88   ;;  %s161_s2 = smov 80   ;;  %v131_v6 = vld [vmem:[%s235_s0 + $0x9] ss:$16 sm:%s49_s28]   ;;  %vm88_vm12 = vcmask 326912   ;;  %vm95_vm13 = vcmask 261312  }
   0x7   :  { %30 = vrot.lane.b32.xlu1 %v128_v3, %s159_s23  ;;  %v132_v7 = vld [vmem:[%s235_s0 + $0x8] ss:$16 sm:%s56_s29]   ;;  %s63_s7 = smov 3  ;;  %s70_s8 = smov 3  ;;  %vm102_vm14 = vcmask 195712   ;;  %vm109_vm15 = vcmask 130112  }
   0x8   :  { %s162_s9 = smov 72   ;;  %s163_s10 = smov 64   ;;  %v133_v8 = vld [vmem:[%s235_s0 + $0x7] ss:$16 sm:%s63_s7]   ;;  %v134_v9 = vld [vmem:[%s235_s0 + $0x6] ss:$16 sm:%s70_s8]  }
   0x9   :  { %s2_s13 = smov 3  ;;  %s77_s16 = smov 3 }
   0xa   :  { %37 = vrot.lane.b32.xlu0 %v129_v4, %s160_s30  ;;  %v3_v10 = vld [vmem:[%s235_s0] ss:$16 sm:%s2_s13]   ;;  %s84_s19 = smov 3  ;;  %s164_s20 = smov 56  }
   0xb   :  { %44 = vrot.lane.b32.xlu1 %v130_v5, %s161_s2  ;;  %5 = vst.msk [vmem:[#allocation0] ss:$8 sm:$0x3] %vm4_vm0, %v3_v10   ;;  %s165_s21 = smov 48   ;;  %v135_v11 = vld [vmem:[%s235_s0 + $0x5] ss:$16 sm:%s77_s16]  }
   0xc   :  { %v136_v12 = vld [vmem:[%s235_s0 + $0x4] ss:$16 sm:%s84_s19]   ;;  %s91_s26 = smov 3  ;;  %s98_s27 = smov 3 }
   0xd   :  { %s166_s28 = smov 40   ;;  %s167_s29 = smov 32   ;;  %v137_v13 = vld [vmem:[%s235_s0 + $0x3] ss:$16 sm:%s91_s26]   ;;  %v138_v14 = vld [vmem:[%s235_s0 + $0x2] ss:$16 sm:%s98_s27]  }
   0xe   :  { %51 = vrot.lane.b32.xlu0 %v131_v6, %s162_s9  ;;  %s105_s5 = smov 3  ;;  %s168_s6 = smov 24  }
   0xf   :  { %58 = vrot.lane.b32.xlu1 %v132_v7, %s163_s10  ;;  %s169_s7 = smov 16   ;;  %v139_v15 = vld [vmem:[%s235_s0 + $0x1] ss:$16 sm:%s105_s5]   ;;  %s170_s0 = smov 8  }
  0x12   :  { %65 = vrot.lane.b32.xlu0 %v133_v8, %s164_s20 }
  0x13   :  { %72 = vrot.lane.b32.xlu1 %v134_v9, %s165_s21 }
  0x16   :  { %79 = vrot.lane.b32.xlu0 %v135_v11, %s166_s28 }
  0x17   :  { %86 = vrot.lane.b32.xlu1 %v136_v12, %s167_s29 }
  0x1a   :  { %93 = vrot.lane.b32.xlu0 %v137_v13, %s168_s6 }
  0x1b   :  { %100 = vrot.lane.b32.xlu1 %v138_v14, %s169_s7 }
  0x1e   :  { %107 = vrot.lane.b32.xlu0 %v139_v15, %s170_s0 }
  0x74   :  { %v10_v16 = vpop.permute.xlu0 %9  }
  0x75   :  { %12 = vst.msk [vmem:[#allocation0] ss:$8 sm:$0x3] %vm11_vm1, %v10_v16   ;;  %v24_v17 = vpop.permute.xlu1 %23  }
  0x78   :  { %v17_v18 = vpop.permute.xlu0 %16  }
  0x79   :  { %19 = vst.msk [vmem:[#allocation0] ss:$8 sm:$0x3] %vm18_vm2, %v17_v18   ;;  %v31_v19 = vpop.permute.xlu1 %30  }
  0x7a   :  { %26 = vst.msk [vmem:[#allocation0] ss:$8 sm:$0x3] %vm25_vm3, %v24_v17  }
  0x7b   :  { %33 = vst.msk [vmem:[#allocation0] ss:$8 sm:$0x3] %vm32_vm4, %v31_v19  }
  0x7c   :  { %v38_v20 = vpop.permute.xlu0 %37  }
  0x7d   :  { %40 = vst.msk [vmem:[#allocation0] ss:$8 sm:$0x3] %vm39_vm5, %v38_v20   ;;  %v45_v21 = vpop.permute.xlu1 %44  }
  0x7e   :  { %47 = vst.msk [vmem:[#allocation0] ss:$8 sm:$0x3] %vm46_vm6, %v45_v21  }
  0x80   :  { %v52_v22 = vpop.permute.xlu0 %51  }
  0x81   :  { %54 = vst.msk [vmem:[#allocation0] ss:$8 sm:$0x3] %vm53_vm7, %v52_v22   ;;  %v59_v23 = vpop.permute.xlu1 %58  }
  0x82   :  { %61 = vst.msk [vmem:[#allocation0] ss:$8 sm:$0x3] %vm60_vm8, %v59_v23  }
  0x84   :  { %v66_v24 = vpop.permute.xlu0 %65  }
  0x85   :  { %68 = vst.msk [vmem:[#allocation0] ss:$8 sm:$0x3] %vm67_vm9, %v66_v24   ;;  %v73_v25 = vpop.permute.xlu1 %72  }
  0x86   :  { %75 = vst.msk [vmem:[#allocation0] ss:$8 sm:$0x3] %vm74_vm10, %v73_v25  }
  0x88   :  { %v80_v26 = vpop.permute.xlu0 %79  }
  0x89   :  { %82 = vst.msk [vmem:[#allocation0] ss:$8 sm:$0x3] %vm81_vm11, %v80_v26   ;;  %v87_v27 = vpop.permute.xlu1 %86  }
  0x8a   :  { %89 = vst.msk [vmem:[#allocation0] ss:$8 sm:$0x3] %vm88_vm12, %v87_v27  }
  0x8c   :  { %v94_v28 = vpop.permute.xlu0 %93  }
  0x8d   :  { %96 = vst.msk [vmem:[#allocation0] ss:$8 sm:$0x3] %vm95_vm13, %v94_v28   ;;  %v101_v29 = vpop.permute.xlu1 %100  }
  0x8e   :  { %103 = vst.msk [vmem:[#allocation0] ss:$8 sm:$0x3] %vm102_vm14, %v101_v29  }
  0x90   :  { %v108_v30 = vpop.permute.xlu0 %107  }
  0x91   :  { %110 = vst.msk [vmem:[#allocation0] ss:$8 sm:$0x3] %vm109_vm15, %v108_v30  }
  0x98   :  { %v115_v31 = vld [vmem:[#allocation0] sm:$0x1]  ;;  %v120_v32 = vld [vmem:[#allocation0 + $0x8] sm:$0x1] }
  0x99   :  { %118 = vst [vmem:[%s236_s1] sm:$0x1] %v115_v31  ;;  %140 = vst [vmem:[%s236_s1 + $0x1] sm:$0x1] %v120_v32 }

// kernel: decoder_block_forward.5
= control target key start
LH: loop header
LB: loop body
LE: loop exit
PB: predicated region body
PF: predicated region fallthrough
CT: control target
= control target key end

     0   :  { %v326_v1 = vmov 0   ;;  %v66_v29 = vlaneseq  ;;  %vm237_vm0 = vcmask 1040384   ;;  %s431_s3 = inlined_call_operand.vmem [shape: bf16[128,256], index: 3, kind: input, shape index: {}]   ;;  %s432_s0 = inlined_call_operand.vmem [shape: bf16[16,128], index: 0, kind: input, shape index: {}]   ;;  %s433_s1 = inlined_call_operand.vmem [shape: f32[1,128], index: 1, kind: input, shape index: {}]   ;;  %s434_s2 = inlined_call_operand.vmem [shape: f32[1,128], index: 2, kind: input, shape index: {}]   ;;  %s435_s4 = inlined_call_operand.vmem [shape: f32[1,256], index: 4, kind: input, shape index: {}]   ;;  %s436_s5 = inlined_call_operand.vmem [shape: bf16[16,256], index: 5, kind: output, shape index: {0}]   ;;  %s437_s6 = inlined_call_operand.vmem [shape: f32[1,2,256], index: 6, kind: output, shape index: {1}]  }
   0x1   :  { %v302_v0 = vld [vmem:[%s431_s3 + $0x74] ss:$8 sps:$4 sm:$0xff]   ;;  %188 = vmatprep.mubr.bf16.mxu0 %v326_v1  ;;  %v304_v2 = vld [vmem:[%s431_s3 + $0x70] ss:$8 sps:$4 sm:$0xff]   ;;  %v305_v3 = vld [vmem:[%s431_s3 + $0x64] ss:$8 sps:$4 sm:$0xff]  }
   0x2   :  { %156 = vmatprep.subr.bf16.mxu0 %v302_v0  ;;  %v307_v4 = vld [vmem:[%s431_s3 + $0x60] ss:$8 sps:$4 sm:$0xff]   ;;  %v308_v5 = vld [vmem:[%s431_s3 + $0x54] ss:$8 sps:$4 sm:$0xff]   ;;  %v310_v6 = vld [vmem:[%s431_s3 + $0x50] ss:$8 sps:$4 sm:$0xff]  }
   0x3   :  { %157 = vmatpush1.bf16.msra.mxu0 %v304_v2  ;;  %v311_v7 = vld [vmem:[%s431_s3 + $0x44] ss:$8 sps:$4 sm:$0xff]   ;;  %v313_v8 = vld [vmem:[%s431_s3 + $0x40] ss:$8 sps:$4 sm:$0xff]   ;;  %v314_v10 = vld [vmem:[%s431_s3 + $0x34] ss:$8 sps:$4 sm:$0xff]  }
   0x4   :  { %158 = vmatprep.subr.bf16.mxu0 %v305_v3  ;;  %v298_v9 = vld [vmem:[%s432_s0] sm:$0xff]   ;;  %v316_v13 = vld [vmem:[%s431_s3 + $0x30] ss:$8 sps:$4 sm:$0xff]   ;;  %v320_v20 = vld [vmem:[%s431_s3 + $0x14] ss:$8 sps:$4 sm:$0xff]   ;;  %v67_v30 = vshrl.u32 %v66_v29, 7 }
   0x5   :  { %v299_v11 = vunpack.c.l.bf16 %v298_v9  ;;  %v300_v12 = vunpack.c.h.bf16 %v298_v9  ;;  %v274_v14 = vld [vmem:[%s433_s1] ss:$0 sm:$0xff]  ;;  %v317_v15 = vld [vmem:[%s431_s3 + $0x24] ss:$8 sps:$4 sm:$0xff]   ;;  %v322_v23 = vld [vmem:[%s431_s3 + $0x10] ss:$8 sps:$4 sm:$0xff]  }
   0x6   :  { %v319_v18 = vld [vmem:[%s431_s3 + $0x20] ss:$8 sps:$4 sm:$0xff]   ;;  %v323_v24 = vld [vmem:[%s431_s3 + $0x4] ss:$8 sps:$4 sm:$0xff]   ;;  %v68_v31 = vsub.s32 0, %v67_v30  ;;  %v72_v32 = vsub.s32 1, %v67_v30 }
   0x7   :  { %159 = vmatpush1.bf16.msra.mxu0 %v307_v4  ;;  %v34_v16 = vmul.f32 %v299_v11, %v274_v14  ;;  %v35_v17 = vmul.f32 %v300_v12, %v274_v14  ;;  %v275_v19 = vld [vmem:[%s434_s2] ss:$0 sm:$0xff] }
   0x8   :  { %160 = vmatprep.subr.bf16.mxu0 %v308_v5  ;;  %v325_v27 = vld [vmem:[%s431_s3] ss:$8 sps:$4 sm:$0xff]  }
   0x9   :  { %v43_v21 = vadd.f32 %v275_v19, %v34_v16  ;;  %v44_v22 = vadd.f32 %v275_v19, %v35_v17  ;;  %v64_v33 = vld [vmem:[%s435_s4] sm:$0x3] }
   0xa   :  { %v69_v34 = vrot.slane %v64_v33, %v68_v31  ;;  %v73_v35 = vrot.slane %v64_v33, %v72_v32 }
   0xb   :  { %161 = vmatpush1.bf16.msra.mxu0 %v310_v6  ;;  %v45_v25 = vmax.f32 %v43_v21, 0.0  ;;  %v46_v26 = vmax.f32 %v44_v22, 0.0 }
   0xc   :  { %162 = vmatprep.subr.bf16.mxu0 %v311_v7 }
   0xd   :  { %v47_v28 = vpack.c.bf16 %v46_v26, %v45_v25 }
   0xf   :  { %163 = vmatpush1.bf16.msra.mxu0 %v313_v8 }
  0x10   :  { %164 = vmatprep.subr.bf16.mxu0 %v314_v10 }
  0x13   :  { %165 = vmatpush1.bf16.msra.mxu0 %v316_v13 }
  0x14   :  { %166 = vmatprep.subr.bf16.mxu0 %v317_v15 }
  0x17   :  { %167 = vmatpush1.bf16.msra.mxu0 %v319_v18 }
  0x18   :  { %168 = vmatprep.subr.bf16.mxu0 %v320_v20 }
  0x1b   :  { %169 = vmatpush1.bf16.msra.mxu0 %v322_v23 }
  0x1c   :  { %170 = vmatprep.subr.bf16.mxu0 %v323_v24 }
  0x1f   :  { %171 = vmatpush1.bf16.msra.mxu0 %v325_v27 }
  0x22   :  { %189 = vmatmul.mubr.bf16.vlgmr.msra.gmra.mxu0 %v47_v28 }
  0xe2   :  { %v190_v36 = vpop.f32.mrf.mxu0 }
  0xe3   :  { %v191_v38 = vadd.f32 %v190_v36, %v69_v34 }
  0xe4   :  { %v192_v37 = vpop.f32.mrf.mxu0 }
  0xe5   :  { %v193_v39 = vadd.f32 %v192_v37, %v73_v35 }
  0xe6   :  { %v194_v40 = vpop.f32.mrf.mxu0 }
  0xe7   :  { %v295_v41 = vpack.c.bf16 %v193_v39, %v191_v38  ;;  %v195_v42 = vadd.f32 %v194_v40, %v69_v34 }
  0xe8   :  { %v196_v43 = vpop.f32.mrf.mxu0 }
  0xe9   :  { %264 = vst [vmem:[%s436_s5] sm:$0xff] %v295_v41  ;;  %v199_v44 = vadd.f32 %v195_v42, %v191_v38  ;;  %v197_v45 = vadd.f32 %v196_v43, %v73_v35 }
  0xeb   :  { %v200_v46 = vrot.slane %v199_v44, 4  ;;  %v206_v47 = vadd.f32 %v197_v45, %v193_v39  ;;  %v296_v48 = vpack.c.bf16 %v197_v45, %v195_v42 }
  0xed   :  { %v201_v49 = vadd.f32 %v200_v46, %v199_v44  ;;  %v207_v50 = vrot.slane %v206_v47, 4  ;;  %265 = vst [vmem:[%s436_s5 + $0x8] sm:$0xff] %v296_v48 }
  0xef   :  { %v202_v51 = vrot.slane %v201_v49, 2  ;;  %v208_v52 = vadd.f32 %v207_v50, %v206_v47 }
  0xf1   :  { %v203_v53 = vadd.f32 %v202_v51, %v201_v49  ;;  %v209_v54 = vrot.slane %v208_v52, 2 }
  0xf3   :  { %v204_v55 = vrot.slane %v203_v53, 1  ;;  %v210_v56 = vadd.f32 %v209_v54, %v208_v52 }
  0xf5   :  { %v205_v57 = vadd.f32 %v204_v55, %v203_v53  ;;  %v211_v58 = vrot.slane %v210_v56, 1 }
  0xf7   :  { %v213_v59 = vmul.f32 0.0625, %v205_v57  ;;  %v212_v60 = vadd.f32 %v211_v58, %v210_v56 }
  0xf9   :  { %v215_v61 = vsub.f32 %v191_v38, %v213_v59  ;;  %v217_v62 = vsub.f32 %v195_v42, %v213_v59  ;;  %v214_v63 = vmul.f32 0.0625, %v212_v60 }
  0xfb   :  { %v219_v0 = vmul.f32 %v215_v61, %v215_v61  ;;  %v221_v1 = vmul.f32 %v217_v62, %v217_v62  ;;  %v216_v2 = vsub.f32 %v193_v39, %v214_v63  ;;  %v218_v3 = vsub.f32 %v197_v45, %v214_v63 }
  0xfd   :  { %v223_v4 = vadd.f32 %v221_v1, %v219_v0  ;;  %v220_v5 = vmul.f32 %v216_v2, %v216_v2  ;;  %v222_v6 = vmul.f32 %v218_v3, %v218_v3 }
  0xff   :  { %v224_v7 = vrot.slane %v223_v4, 4  ;;  %v230_v8 = vadd.f32 %v222_v6, %v220_v5 }
 0x101   :  { %v225_v9 = vadd.f32 %v224_v7, %v223_v4  ;;  %v231_v10 = vrot.slane %v230_v8, 4 }
 0x103   :  { %v226_v11 = vrot.slane %v225_v9, 2  ;;  %v232_v12 = vadd.f32 %v231_v10, %v230_v8 }
 0x105   :  { %v227_v13 = vadd.f32 %v226_v11, %v225_v9  ;;  %v233_v14 = vrot.slane %v232_v12, 2 }
 0x107   :  { %v228_v15 = vrot.slane %v227_v13, 1  ;;  %v234_v16 = vadd.f32 %v233_v14, %v232_v12 }
 0x109   :  { %v229_v17 = vadd.f32 %v228_v15, %v227_v13  ;;  %v235_v18 = vrot.slane %v234_v16, 1 }
 0x10b   :  { %v236_v19 = vadd.f32 %v235_v18, %v234_v16  ;;  %v238_v20 = vsel %vm237_vm0, %v205_v57, %v229_v17 }
 0x10d   :  { %v239_v21 = vsel %vm237_vm0, %v212_v60, %v236_v19 }
 0x10e   :  { %v242_v22 = vcombine.low %v238_v20, %v239_v21 }
 0x110   :  { %292 = vst.sshfl [vmem:[%s437_s6] sm:$0x33 pattern:$0x76325410] %v242_v22 }

</bundles_post_ra>
